<compile_context>
chip_gen: v7x
topology: tpu7x:2x2x1
jax: 0.10.0
libtpu: 0.0.40
codegen_flags: <defaults>
</compile_context>

<pallas_src>
import functools
import math

import jax
import jax.numpy as jnp
from jax import lax
from jax.experimental import pallas as pl
from jax.experimental.pallas import tpu as pltpu

_NEG_BIG = -1e30  # finite mask sentinel (never -inf: exp(-inf - -inf) => NaN)


def _gat_layer_kernel(counts_ref,                                   # SMEM prefetch
                      hs_ref, hd_ref, adj_ref, ws_ref, adst_ref, b_ref,   # inputs
                      o_ref,                                              # output
                      er_scr, m_scr, l_scr, acc_scr,                      # VMEM scratch
                      *, num_heads, out_feats, negative_slope,
                      apply_relu, finalize):
    H, F = num_heads, out_feats
    HF = H * F
    di = pl.program_id(0)
    si = pl.program_id(1)
    ns_tiles = pl.num_programs(1)

    # ---- first src tile of each dst tile: er projection + online-softmax init
    @pl.when(si == 0)
    def _init():
        hd = hd_ref[...].astype(jnp.bfloat16)                       # (td, Din)
        er_scr[...] = jnp.dot(hd, adst_ref[...],                    # (td, H)
                              preferred_element_type=jnp.float32)
        m_scr[...] = jnp.full_like(m_scr, _NEG_BIG)
        l_scr[...] = jnp.zeros_like(l_scr)
        acc_scr[...] = jnp.zeros_like(acc_scr)

    # ---- per (dst, src) tile update; skipped entirely when the tile has no edges
    @pl.when(counts_ref[di * ns_tiles + si] > 0)
    def _update():
        hs = hs_ref[...].astype(jnp.bfloat16)                       # (ts, Din)
        # One MXU matmul: every head's feat_src plus the folded attn_l columns.
        feat_aug = jnp.dot(hs, ws_ref[...],
                           preferred_element_type=jnp.float32)      # (ts, HF+H)
        feat_src = feat_aug[:, :HF].astype(jnp.bfloat16)            # (ts, HF)
        el_slab = feat_aug[:, HF:HF + H]                            # (ts, H)
        # (ts,H) -> (H,ts): tiny K=H identity matmul (one MXU pass per src tile,
        # vs ceil(Din/256) passes for a separate a_src @ hs^T contraction).
        eye = (lax.broadcasted_iota(jnp.int32, (H, H), 0) ==
               lax.broadcasted_iota(jnp.int32, (H, H), 1)).astype(jnp.float32)
        el_t = lax.dot_general(eye, el_slab, (((1,), (1,)), ((), ())),
                               preferred_element_type=jnp.float32)  # (H, ts)

        # int8 adjacency never touches the MXU; mask is a VPU compare.
        mask = adj_ref[...].astype(jnp.float32) > 0.0               # (td, ts)

        er_all = er_scr[...]                                        # (td, H)
        m_all = m_scr[...]
        l_all = l_scr[...]
        acc_all = acc_scr[...]                                      # (td, HF)
        new_m, new_l, new_acc = [], [], []
        for h in range(H):                                          # H tiny & static
            e = er_all[:, h:h + 1] + el_t[h:h + 1, :]               # (td, ts)
            e = jnp.where(e > 0, e, negative_slope * e)             # LeakyReLU
            e = jnp.where(mask, e, _NEG_BIG)
            m_old = m_all[:, h:h + 1]
            m_new = jnp.maximum(m_old, jnp.max(e, axis=-1, keepdims=True))
            corr = jnp.exp(m_old - m_new)
            p = jnp.where(mask, jnp.exp(e - m_new), 0.0)            # isolated-row safe
            new_m.append(m_new)
            new_l.append(corr * l_all[:, h:h + 1] +
                         jnp.sum(p, axis=-1, keepdims=True))
            # Per-head aggregation matmul (replaces the block-diagonal blow-up).
            new_acc.append(corr * acc_all[:, h * F:(h + 1) * F] +
                           jnp.dot(p.astype(jnp.bfloat16),
                                   feat_src[:, h * F:(h + 1) * F],
                                   preferred_element_type=jnp.float32))
        m_scr[...] = jnp.concatenate(new_m, axis=1)
        l_scr[...] = jnp.concatenate(new_l, axis=1)
        acc_scr[...] = jnp.concatenate(new_acc, axis=1)

    # ---- epilogue on the last src tile
    @pl.when(si == ns_tiles - 1)
    def _finalize():
        l_all = jnp.maximum(l_scr[...], 1e-20)                      # NaN-safe
        acc_all = acc_scr[...]
        outs = []
        for h in range(H):
            inv = pl.reciprocal(l_all[:, h:h + 1], approx=True)     # EUP slot
            outs.append(acc_all[:, h * F:(h + 1) * F] * inv)
        out = jnp.concatenate(outs, axis=1) + b_ref[...]            # (td, HF)
        if apply_relu:
            out = jnp.maximum(out, 0.0)
        if finalize:
            # Fused epilogue: mean over heads, then log_softmax over classes.
            acc = out[:, 0:F]
            for h in range(1, H):
                acc = acc + out[:, h * F:(h + 1) * F]
            acc = acc * (1.0 / H)
            z = acc - jnp.max(acc, axis=-1, keepdims=True)
            lse = jnp.log(jnp.sum(jnp.exp(z), axis=-1, keepdims=True))
            o_ref[...] = (z - lse).astype(o_ref.dtype)
        else:
            o_ref[...] = out.astype(o_ref.dtype)


def _pick_tile(n, cap, quantum):
    """Largest tile <= cap that is a multiple of quantum and divides n; else n."""
    if n <= cap:
        return n
    t = (cap // quantum) * quantum
    while t >= quantum:
        if n % t == 0:
            return t
        t -= quantum
    return n  # TODO(synk): ragged / non-divisible tiles via masked edge blocks


def gat_conv(h, adj, ws_aug, a_dst, bias, *, num_heads, out_feats,
             negative_slope=0.2, apply_relu=True, finalize=False,
             dst_tile_cap=256, src_tile_cap=512):
    """One head-fused DGL-style GATConv layer on a bipartite block.

    h   : (N_src, D_in) node features; dst nodes are the leading N_dst rows.
    adj : (N_dst, N_src) int8 adjacency (nonzero = edge src->dst).
    Returns (N_dst, H*F) bf16 (already the next layer's input layout), or
    (N_dst, F) f32 with head-mean + log_softmax fused when finalize=True.
    """
    Ns, d_in = h.shape
    Nd = adj.shape[0]
    H, F = num_heads, out_feats
    HF = H * F
    # Tile caps keep the double-buffered per-step working set well under v7x's
    # 64 MiB VMEM; v5e/v6e (128 MiB) could take larger src tiles.
    td = _pick_tile(Nd, dst_tile_cap, 32)    # 32 covers f32(8)/bf16(16)/int8(32) sublanes
    ts = _pick_tile(Ns, src_tile_cap, 128)   # lane quantum of the adjacency tile
    nd_t, ns_t = Nd // td, Ns // ts

    # Per-(dst,src) tile nonzero counts -> SMEM scalar prefetch (flattened 1-D to
    # dodge SMEM 2-D padding); empty tiles skip all per-edge work in the kernel.
    counts = adj.astype(jnp.int32).reshape(nd_t, td, ns_t, ts).sum(axis=(1, 3))
    counts = counts.reshape(-1)

    out_cols = F if finalize else HF
    out_dtype = jnp.float32 if finalize else jnp.bfloat16

    kernel = functools.partial(
        _gat_layer_kernel, num_heads=H, out_feats=F,
        negative_slope=negative_slope, apply_relu=apply_relu, finalize=finalize)

    return pl.pallas_call(
        kernel,
        out_shape=jax.ShapeDtypeStruct((Nd, out_cols), out_dtype),
        grid_spec=pltpu.PrefetchScalarGridSpec(
            num_scalar_prefetch=1,
            grid=(nd_t, ns_t),                                   # reduction axis last
            in_specs=[
                pl.BlockSpec((ts, d_in), lambda di, si, c: (si, 0)),   # h, src view
                pl.BlockSpec((td, d_in), lambda di, si, c: (di, 0)),   # h, dst view
                pl.BlockSpec((td, ts), lambda di, si, c: (di, si)),    # adjacency (int8)
                pl.BlockSpec((d_in, HF + H), lambda di, si, c: (0, 0)),  # [W_src | a_src]
                pl.BlockSpec((d_in, H), lambda di, si, c: (0, 0)),       # a_dst
                pl.BlockSpec((1, HF), lambda di, si, c: (0, 0)),         # bias
            ],
            out_specs=pl.BlockSpec((td, out_cols), lambda di, si, c: (di, 0)),
            scratch_shapes=[
                pltpu.VMEM((td, H), jnp.float32),    # er (cached per dst tile)
                pltpu.VMEM((td, H), jnp.float32),    # running max m
                pltpu.VMEM((td, H), jnp.float32),    # running denom l
                pltpu.VMEM((td, HF), jnp.float32),   # running numerator acc
            ],
        ),
        compiler_params=pltpu.CompilerParams(
            dimension_semantics=("parallel", "arbitrary"),  # dst axis -> v7x's 2 TCs
            vmem_limit_bytes=64 * 1024 * 1024),
    )(counts, h, h, adj, ws_aug, a_dst, bias)


def stack_gat_params(p):
    """Fold per-head GATConv params into head-fused, attention-folded form.

    ws_aug : (D_in, H*F + H) bf16  -- stacked W_src with W_src @ attn_l columns
    a_dst  : (D_in, H)       bf16  -- W_dst @ attn_r (feat_dst only feeds er)
    bias   : (1, H*F)        f32   -- head-major
    """
    w_src, w_dst = p["w_src"], p["w_dst"]          # (H, Din, F)
    attn_l, attn_r = p["attn_l"], p["attn_r"]      # (H, 1, F)
    H, d_src, F = w_src.shape
    ws = jnp.transpose(w_src, (1, 0, 2)).reshape(d_src, H * F)   # head-major lanes
    a_src = jnp.einsum("hdf,hf->dh", w_src, attn_l[:, 0, :])     # (Din, H)
    a_dst = jnp.einsum("hdf,hf->dh", w_dst, attn_r[:, 0, :])     # (Din, H)
    ws_aug = jnp.concatenate([ws, a_src], axis=1)                # (Din, H*F + H)
    b = p["bias"].reshape(1, H * F)
    return (ws_aug.astype(jnp.bfloat16), a_dst.astype(jnp.bfloat16),
            b.astype(jnp.float32))


def init_gat_params(key, in_src, in_dst, out_feats, num_heads):
    """Deterministic xavier-normal init matching DGL GATConv parameter shapes."""
    k1, k2, k3, k4 = jax.random.split(key, 4)

    def xavier(k, shape, fan_in, fan_out):
        std = math.sqrt(2.0 / (fan_in + fan_out))
        return std * jax.random.normal(k, shape, dtype=jnp.float32)

    return dict(
        w_src=xavier(k1, (num_heads, in_src, out_feats), in_src, num_heads * out_feats),
        w_dst=xavier(k2, (num_heads, in_dst, out_feats), in_dst, num_heads * out_feats),
        attn_l=xavier(k3, (num_heads, 1, out_feats), out_feats, 1),
        attn_r=xavier(k4, (num_heads, 1, out_feats), out_feats, 1),
        bias=jnp.zeros((num_heads, 1, out_feats), jnp.float32),
    )


if __name__ == "__main__":
    # GAT(in_feats=16, n_hidden=8, n_classes=4, n_layers=2, num_heads=2, relu)
    in_feats, n_hidden, n_classes, n_layers, num_heads = 16, 8, 4, 2, 2
    N0_src, N0_dst = 64, 32     # block 0: 64 src nodes -> 32 dst nodes
    N1_src, N1_dst = 32, 16     # block 1: 32 src nodes -> 16 dst nodes

    key = jax.random.PRNGKey(0)
    kx, ka0, ka1, kp0, kp1 = jax.random.split(key, 5)

    x = jax.random.normal(kx, (N0_src, in_feats), dtype=jnp.float32)

    def make_adj(k, nd, ns):
        adj = jax.random.uniform(k, (nd, ns)) < 0.3
        # each dst node keeps its own src copy as a neighbor (as in DGL blocks)
        eye = jnp.zeros((nd, ns), bool).at[jnp.arange(nd), jnp.arange(nd)].set(True)
        return jnp.logical_or(adj, eye).astype(jnp.int8)   # int8: quarters adj DMA

    adj0 = make_adj(ka0, N0_dst, N0_src)
    adj1 = make_adj(ka1, N1_dst, N1_src)

    params0 = init_gat_params(kp0, in_feats, in_feats, n_hidden, num_heads)
    params1 = init_gat_params(kp1, n_hidden * num_heads, n_hidden * num_heads,
                              n_classes, num_heads)

    @jax.jit
    def gat_forward(x, adj0, adj1, p0, p1):
        ws0, ad0, b0 = stack_gat_params(p0)
        ws1, ad1, b1 = stack_gat_params(p1)
        # layer 0: relu activation, bf16 (N0_dst, H*n_hidden) flattened output
        h = gat_conv(x, adj0, ws0, ad0, b0, num_heads=num_heads,
                     out_feats=n_hidden, apply_relu=True, finalize=False)
        # layer 1: no activation; head-mean + log_softmax fused into the epilogue
        out = gat_conv(h, adj1, ws1, ad1, b1, num_heads=num_heads,
                       out_feats=n_classes, apply_relu=False, finalize=True)
        return out

    out = gat_forward(x, adj0, adj1, params0, params1)
    jax.block_until_ready(out)

    # Pure-JAX f32 reference (DGL GATConv semantics) for a loose sanity check.
    def ref_layer(h, adj, p, *, apply_relu, finalize):
        H = p["w_src"].shape[0]
        Nd = adj.shape[0]
        feat_src = jnp.einsum("nd,hdf->nhf", h, p["w_src"])
        feat_dst = jnp.einsum("nd,hdf->nhf", h[:Nd], p["w_dst"])
        el = jnp.einsum("nhf,hf->nh", feat_src, p["attn_l"][:, 0, :])
        er = jnp.einsum("nhf,hf->nh", feat_dst, p["attn_r"][:, 0, :])
        e = er[:, None, :] + el[None, :, :]
        e = jnp.where(e > 0, e, 0.2 * e)
        mask = (adj > 0)[:, :, None]
        e = jnp.where(mask, e, -1e30)
        a = jax.nn.softmax(e, axis=1)
        rst = jnp.einsum("dsh,shf->dhf", a, feat_src) + p["bias"].reshape(1, H, -1)
        if apply_relu:
            rst = jax.nn.relu(rst)
        if finalize:
            return jax.nn.log_softmax(rst.mean(axis=1), axis=-1)
        return rst.reshape(Nd, -1)

    href = ref_layer(x, adj0, params0, apply_relu=True, finalize=False)
    ref = ref_layer(href, adj1, params1, apply_relu=False, finalize=True)

    assert out.shape == (N1_dst, n_classes)
    assert bool(jnp.all(jnp.isfinite(out)))
    # bf16 matmul operands + approx reciprocal => loose tolerance vs f32 reference.
    assert bool(jnp.allclose(out, ref, atol=0.1, rtol=0.1)), \
        float(jnp.max(jnp.abs(out - ref)))
    print("KERNEL_OK")
</pallas_src>

<mosaic_0001>
module attributes {stable_mosaic.version = 11 : i64} {
  func.func @_gat_layer_kernel(%arg0: i32, %arg1: i32, %arg2: memref<1xi32, #tpu.memory_space<smem>>, %arg3: memref<64x16xf32, #tpu.memory_space<vmem>>, %arg4: memref<32x16xf32, #tpu.memory_space<vmem>>, %arg5: memref<32x64xi8, #tpu.memory_space<vmem>>, %arg6: memref<16x18xbf16, #tpu.memory_space<vmem>>, %arg7: memref<16x2xbf16, #tpu.memory_space<vmem>>, %arg8: memref<1x16xf32, #tpu.memory_space<vmem>>, %arg9: memref<32x16xbf16, #tpu.memory_space<vmem>>, %arg10: memref<32x2xf32, #tpu.memory_space<vmem>>, %arg11: memref<32x2xf32, #tpu.memory_space<vmem>>, %arg12: memref<32x2xf32, #tpu.memory_space<vmem>>, %arg13: memref<32x16xf32, #tpu.memory_space<vmem>>) attributes {dimension_semantics = [#tpu.dimension_semantics<parallel>, #tpu.dimension_semantics<arbitrary>], iteration_bounds = array<i64: 1, 1>, scalar_prefetch = 1 : i64, scratch_operands = 4 : i64, tpu.core_type = #tpu.core_type<tc>, window_params = [{transform_indices = @transform_0, window_bounds = array<i64: 64, 16>}, {transform_indices = @transform_1, window_bounds = array<i64: 32, 16>}, {transform_indices = @transform_2, window_bounds = array<i64: 32, 64>}, {pipeline_mode = #tpu.pipeline_mode<synchronous>, transform_indices = @transform_3, window_bounds = array<i64: 16, 18>}, {pipeline_mode = #tpu.pipeline_mode<synchronous>, transform_indices = @transform_4, window_bounds = array<i64: 16, 2>}, {pipeline_mode = #tpu.pipeline_mode<synchronous>, transform_indices = @transform_5, window_bounds = array<i64: 1, 16>}, {transform_indices = @transform_6, window_bounds = array<i64: 32, 16>}]} {
    %c0_i32 = arith.constant 0 : i32
    %0 = arith.cmpi eq, %arg1, %c0_i32 : i32
    %1 = arith.extui %0 : i1 to i32
    %c0_i32_0 = arith.constant 0 : i32
    %2 = arith.cmpi ne, %1, %c0_i32_0 : i32
    scf.if %2 {
      %c0 = arith.constant 0 : index
      %c0_5 = arith.constant 0 : index
      %13 = vector.load %arg4[%c0, %c0_5] : memref<32x16xf32, #tpu.memory_space<vmem>>, vector<32x16xf32>
      %14 = arith.truncf %13 : vector<32x16xf32> to vector<32x16xbf16>
      %c0_6 = arith.constant 0 : index
      %c0_7 = arith.constant 0 : index
      %15 = vector.load %arg7[%c0_6, %c0_7] : memref<16x2xbf16, #tpu.memory_space<vmem>>, vector<16x2xbf16>
      %cst = arith.constant dense<0.000000e+00> : vector<32x2xf32>
      %16 = tpu.matmul %14, %15, %cst {dimension_numbers = #tpu.dot_dimension_numbers<[1], [0], [0], [1], [0, 0, 1, 1], [], []>} : vector<32x16xbf16>, vector<16x2xbf16>, vector<32x2xf32> -> vector<32x2xf32>
      %c0_8 = arith.constant 0 : index
      %c0_9 = arith.constant 0 : index
      %17 = vector.load %arg10[%c0_8, %c0_9] : memref<32x2xf32, #tpu.memory_space<vmem>>, vector<32x2xf32>
      tpu.vector_store %arg10[%c0_8, %c0_9], %16 {strides = array<i32>} : memref<32x2xf32, #tpu.memory_space<vmem>>, vector<32x2xf32>,
      %cst_10 = arith.constant -1.000000e+30 : f32
      %18 = vector.broadcast %cst_10 : f32 to vector<32x2xf32>
      %c0_11 = arith.constant 0 : index
      %c0_12 = arith.constant 0 : index
      %19 = vector.load %arg11[%c0_11, %c0_12] : memref<32x2xf32, #tpu.memory_space<vmem>>, vector<32x2xf32>
      tpu.vector_store %arg11[%c0_11, %c0_12], %18 {strides = array<i32>} : memref<32x2xf32, #tpu.memory_space<vmem>>, vector<32x2xf32>,
      %cst_13 = arith.constant 0.000000e+00 : f32
      %20 = vector.broadcast %cst_13 : f32 to vector<32x2xf32>
      %c0_14 = arith.constant 0 : index
      %c0_15 = arith.constant 0 : index
      %21 = vector.load %arg12[%c0_14, %c0_15] : memref<32x2xf32, #tpu.memory_space<vmem>>, vector<32x2xf32>
      tpu.vector_store %arg12[%c0_14, %c0_15], %20 {strides = array<i32>} : memref<32x2xf32, #tpu.memory_space<vmem>>, vector<32x2xf32>,
      %cst_16 = arith.constant 0.000000e+00 : f32
      %22 = vector.broadcast %cst_16 : f32 to vector<32x16xf32>
      %c0_17 = arith.constant 0 : index
      %c0_18 = arith.constant 0 : index
      %23 = vector.load %arg13[%c0_17, %c0_18] : memref<32x16xf32, #tpu.memory_space<vmem>>, vector<32x16xf32>
      tpu.vector_store %arg13[%c0_17, %c0_18], %22 {strides = array<i32>} : memref<32x16xf32, #tpu.memory_space<vmem>>, vector<32x16xf32>,
    } else {
    }
    %c1_i32 = arith.constant 1 : i32
    %3 = arith.muli %arg0, %c1_i32 : i32
    %4 = arith.addi %3, %arg1 : i32
    %5 = arith.index_cast %4 : i32 to index
    %6 = memref.load %arg2[%5] : memref<1xi32, #tpu.memory_space<smem>>
    %c0_i32_1 = arith.constant 0 : i32
    %7 = arith.cmpi sgt, %6, %c0_i32_1 : i32
    %8 = arith.extui %7 : i1 to i32
    %c0_i32_2 = arith.constant 0 : i32
    %9 = arith.cmpi ne, %8, %c0_i32_2 : i32
    scf.if %9 {
      %c0 = arith.constant 0 : index
      %c0_5 = arith.constant 0 : index
      %13 = vector.load %arg3[%c0, %c0_5] : memref<64x16xf32, #tpu.memory_space<vmem>>, vector<64x16xf32>
      %14 = arith.truncf %13 : vector<64x16xf32> to vector<64x16xbf16>
      %c0_6 = arith.constant 0 : index
      %c0_7 = arith.constant 0 : index
      %15 = vector.load %arg6[%c0_6, %c0_7] : memref<16x18xbf16, #tpu.memory_space<vmem>>, vector<16x18xbf16>
      %cst = arith.constant dense<0.000000e+00> : vector<64x18xf32>
      %16 = tpu.matmul %14, %15, %cst {dimension_numbers = #tpu.dot_dimension_numbers<[1], [0], [0], [1], [0, 0, 1, 1], [], []>} : vector<64x16xbf16>, vector<16x18xbf16>, vector<64x18xf32> -> vector<64x18xf32>
      %17 = vector.extract_strided_slice %16 {offsets = [0, 0], sizes = [64, 16], strides = [1, 1]} : vector<64x18xf32> to vector<64x16xf32>
      %18 = arith.truncf %17 : vector<64x16xf32> to vector<64x16xbf16>
      %19 = vector.extract_strided_slice %16 {offsets = [0, 16], sizes = [64, 2], strides = [1, 1]} : vector<64x18xf32> to vector<64x2xf32>
      %20 = tpu.iota {dimensions = array<i32: 0>} : vector<2x2xi32>
      %21 = tpu.iota {dimensions = array<i32: 1>} : vector<2x2xi32>
      %22 = arith.cmpi eq, %20, %21 : vector<2x2xi32>
      %23 = arith.extui %22 : vector<2x2xi1> to vector<2x2xi32>
      %24 = arith.sitofp %23 : vector<2x2xi32> to vector<2x2xf32>
      %cst_8 = arith.constant dense<0.000000e+00> : vector<2x64xf32>
      %25 = tpu.matmul %24, %19, %cst_8 {dimension_numbers = #tpu.dot_dimension_numbers<[1], [1], [0], [0], [0, 0, 1, 0], [], []>} : vector<2x2xf32>, vector<64x2xf32>, vector<2x64xf32> -> vector<2x64xf32>
      %c0_9 = arith.constant 0 : index
      %c0_10 = arith.constant 0 : index
      %26 = vector.load %arg5[%c0_9, %c0_10] : memref<32x64xi8, #tpu.memory_space<vmem>>, vector<32x64xi8>
      %27 = arith.sitofp %26 : vector<32x64xi8> to vector<32x64xf32>
      %cst_11 = arith.constant 0.000000e+00 : f32
      %28 = vector.broadcast %cst_11 : f32 to vector<32x64xf32>
      %29 = arith.cmpf ogt, %27, %28 : vector<32x64xf32>
      %c0_12 = arith.constant 0 : index
      %c0_13 = arith.constant 0 : index
      %30 = vector.load %arg10[%c0_12, %c0_13] : memref<32x2xf32, #tpu.memory_space<vmem>>, vector<32x2xf32>
      %c0_14 = arith.constant 0 : index
      %c0_15 = arith.constant 0 : index
      %31 = vector.load %arg11[%c0_14, %c0_15] : memref<32x2xf32, #tpu.memory_space<vmem>>, vector<32x2xf32>
      %c0_16 = arith.constant 0 : index
      %c0_17 = arith.constant 0 : index
      %32 = vector.load %arg12[%c0_16, %c0_17] : memref<32x2xf32, #tpu.memory_space<vmem>>, vector<32x2xf32>
      %c0_18 = arith.constant 0 : index
      %c0_19 = arith.constant 0 : index
      %33 = vector.load %arg13[%c0_18, %c0_19] : memref<32x16xf32, #tpu.memory_space<vmem>>, vector<32x16xf32>
      %34 = vector.extract_strided_slice %30 {offsets = [0, 0], sizes = [32, 1], strides = [1, 1]} : vector<32x2xf32> to vector<32x1xf32>
      %35 = vector.extract_strided_slice %25 {offsets = [0, 0], sizes = [1, 64], strides = [1, 1]} : vector<2x64xf32> to vector<1x64xf32>
      %36 = vector.broadcast %34 : vector<32x1xf32> to vector<32x64xf32>
      %37 = vector.broadcast %35 : vector<1x64xf32> to vector<32x64xf32>
      %38 = arith.addf %36, %37 : vector<32x64xf32>
      %cst_20 = arith.constant 0.000000e+00 : f32
      %39 = vector.broadcast %cst_20 : f32 to vector<32x64xf32>
      %40 = arith.cmpf ogt, %38, %39 : vector<32x64xf32>
      %cst_21 = arith.constant 2.000000e-01 : f32
      %41 = vector.broadcast %cst_21 : f32 to vector<32x64xf32>
      %42 = arith.mulf %41, %38 : vector<32x64xf32>
      %43 = arith.select %40, %38, %42 : vector<32x64xi1>, vector<32x64xf32>
      %cst_22 = arith.constant -1.000000e+30 : f32
      %44 = vector.broadcast %cst_22 : f32 to vector<32x64xf32>
      %45 = arith.select %29, %43, %44 : vector<32x64xi1>, vector<32x64xf32>
      %46 = vector.extract_strided_slice %31 {offsets = [0, 0], sizes = [32, 1], strides = [1, 1]} : vector<32x2xf32> to vector<32x1xf32>
      %cst_23 = arith.constant dense<0xFF800000> : vector<32xf32>
      %47 = vector.multi_reduction <maximumf>, %45, %cst_23 [1] : vector<32x64xf32> to vector<32xf32>
      %48 = vector.shape_cast %47 : vector<32xf32> to vector<32x1xf32>
      %49 = arith.maximumf %46, %48 : vector<32x1xf32>
      %50 = arith.subf %46, %49 : vector<32x1xf32>
      %51 = math.exp %50 : vector<32x1xf32>
      %52 = vector.broadcast %49 : vector<32x1xf32> to vector<32x64xf32>
      %53 = arith.subf %45, %52 : vector<32x64xf32>
      %54 = math.exp %53 : vector<32x64xf32>
      %cst_24 = arith.constant 0.000000e+00 : f32
      %55 = vector.broadcast %cst_24 : f32 to vector<32x64xf32>
      %56 = arith.select %29, %54, %55 : vector<32x64xi1>, vector<32x64xf32>
      %57 = vector.extract_strided_slice %32 {offsets = [0, 0], sizes = [32, 1], strides = [1, 1]} : vector<32x2xf32> to vector<32x1xf32>
      %58 = arith.mulf %51, %57 : vector<32x1xf32>
      %cst_25 = arith.constant dense<0.000000e+00> : vector<32xf32>
      %59 = vector.multi_reduction <add>, %56, %cst_25 [1] : vector<32x64xf32> to vector<32xf32>
      %60 = vector.shape_cast %59 : vector<32xf32> to vector<32x1xf32>
      %61 = arith.addf %58, %60 : vector<32x1xf32>
      %62 = vector.extract_strided_slice %33 {offsets = [0, 0], sizes = [32, 8], strides = [1, 1]} : vector<32x16xf32> to vector<32x8xf32>
      %63 = vector.broadcast %51 : vector<32x1xf32> to vector<32x8xf32>
      %64 = arith.mulf %63, %62 : vector<32x8xf32>
      %65 = arith.truncf %56 : vector<32x64xf32> to vector<32x64xbf16>
      %66 = vector.extract_strided_slice %18 {offsets = [0, 0], sizes = [64, 8], strides = [1, 1]} : vector<64x16xbf16> to vector<64x8xbf16>
      %cst_26 = arith.constant dense<0.000000e+00> : vector<32x8xf32>
      %67 = tpu.matmul %65, %66, %cst_26 {dimension_numbers = #tpu.dot_dimension_numbers<[1], [0], [0], [1], [0, 0, 1, 1], [], []>} : vector<32x64xbf16>, vector<64x8xbf16>, vector<32x8xf32> -> vector<32x8xf32>
      %68 = arith.addf %64, %67 : vector<32x8xf32>
      %69 = vector.extract_strided_slice %30 {offsets = [0, 1], sizes = [32, 1], strides = [1, 1]} : vector<32x2xf32> to vector<32x1xf32>
      %70 = vector.extract_strided_slice %25 {offsets = [1, 0], sizes = [1, 64], strides = [1, 1]} : vector<2x64xf32> to vector<1x64xf32>
      %71 = vector.broadcast %69 : vector<32x1xf32> to vector<32x64xf32>
      %72 = vector.broadcast %70 : vector<1x64xf32> to vector<32x64xf32>
      %73 = arith.addf %71, %72 : vector<32x64xf32>
      %cst_27 = arith.constant 0.000000e+00 : f32
      %74 = vector.broadcast %cst_27 : f32 to vector<32x64xf32>
      %75 = arith.cmpf ogt, %73, %74 : vector<32x64xf32>
      %cst_28 = arith.constant 2.000000e-01 : f32
      %76 = vector.broadcast %cst_28 : f32 to vector<32x64xf32>
      %77 = arith.mulf %76, %73 : vector<32x64xf32>
      %78 = arith.select %75, %73, %77 : vector<32x64xi1>, vector<32x64xf32>
      %cst_29 = arith.constant -1.000000e+30 : f32
      %79 = vector.broadcast %cst_29 : f32 to vector<32x64xf32>
      %80 = arith.select %29, %78, %79 : vector<32x64xi1>, vector<32x64xf32>
      %81 = vector.extract_strided_slice %31 {offsets = [0, 1], sizes = [32, 1], strides = [1, 1]} : vector<32x2xf32> to vector<32x1xf32>
      %cst_30 = arith.constant dense<0xFF800000> : vector<32xf32>
      %82 = vector.multi_reduction <maximumf>, %80, %cst_30 [1] : vector<32x64xf32> to vector<32xf32>
      %83 = vector.shape_cast %82 : vector<32xf32> to vector<32x1xf32>
      %84 = arith.maximumf %81, %83 : vector<32x1xf32>
      %85 = arith.subf %81, %84 : vector<32x1xf32>
      %86 = math.exp %85 : vector<32x1xf32>
      %87 = vector.broadcast %84 : vector<32x1xf32> to vector<32x64xf32>
      %88 = arith.subf %80, %87 : vector<32x64xf32>
      %89 = math.exp %88 : vector<32x64xf32>
      %cst_31 = arith.constant 0.000000e+00 : f32
      %90 = vector.broadcast %cst_31 : f32 to vector<32x64xf32>
      %91 = arith.select %29, %89, %90 : vector<32x64xi1>, vector<32x64xf32>
      %92 = vector.extract_strided_slice %32 {offsets = [0, 1], sizes = [32, 1], strides = [1, 1]} : vector<32x2xf32> to vector<32x1xf32>
      %93 = arith.mulf %86, %92 : vector<32x1xf32>
      %cst_32 = arith.constant dense<0.000000e+00> : vector<32xf32>
      %94 = vector.multi_reduction <add>, %91, %cst_32 [1] : vector<32x64xf32> to vector<32xf32>
      %95 = vector.shape_cast %94 : vector<32xf32> to vector<32x1xf32>
      %96 = arith.addf %93, %95 : vector<32x1xf32>
      %97 = vector.extract_strided_slice %33 {offsets = [0, 8], sizes = [32, 8], strides = [1, 1]} : vector<32x16xf32> to vector<32x8xf32>
      %98 = vector.broadcast %86 : vector<32x1xf32> to vector<32x8xf32>
      %99 = arith.mulf %98, %97 : vector<32x8xf32>
      %100 = arith.truncf %91 : vector<32x64xf32> to vector<32x64xbf16>
      %101 = vector.extract_strided_slice %18 {offsets = [0, 8], sizes = [64, 8], strides = [1, 1]} : vector<64x16xbf16> to vector<64x8xbf16>
      %cst_33 = arith.constant dense<0.000000e+00> : vector<32x8xf32>
      %102 = tpu.matmul %100, %101, %cst_33 {dimension_numbers = #tpu.dot_dimension_numbers<[1], [0], [0], [1], [0, 0, 1, 1], [], []>} : vector<32x64xbf16>, vector<64x8xbf16>, vector<32x8xf32> -> vector<32x8xf32>
      %103 = arith.addf %99, %102 : vector<32x8xf32>
      %104 = tpu.concatenate %49, %84 in 1 : vector<32x1xf32>, vector<32x1xf32> -> vector<32x2xf32>
      %c0_34 = arith.constant 0 : index
      %c0_35 = arith.constant 0 : index
      %105 = vector.load %arg11[%c0_34, %c0_35] : memref<32x2xf32, #tpu.memory_space<vmem>>, vector<32x2xf32>
      tpu.vector_store %arg11[%c0_34, %c0_35], %104 {strides = array<i32>} : memref<32x2xf32, #tpu.memory_space<vmem>>, vector<32x2xf32>,
      %106 = tpu.concatenate %61, %96 in 1 : vector<32x1xf32>, vector<32x1xf32> -> vector<32x2xf32>
      %c0_36 = arith.constant 0 : index
      %c0_37 = arith.constant 0 : index
      %107 = vector.load %arg12[%c0_36, %c0_37] : memref<32x2xf32, #tpu.memory_space<vmem>>, vector<32x2xf32>
      tpu.vector_store %arg12[%c0_36, %c0_37], %106 {strides = array<i32>} : memref<32x2xf32, #tpu.memory_space<vmem>>, vector<32x2xf32>,
      %108 = tpu.concatenate %68, %103 in 1 : vector<32x8xf32>, vector<32x8xf32> -> vector<32x16xf32>
      %c0_38 = arith.constant 0 : index
      %c0_39 = arith.constant 0 : index
      %109 = vector.load %arg13[%c0_38, %c0_39] : memref<32x16xf32, #tpu.memory_space<vmem>>, vector<32x16xf32>
      tpu.vector_store %arg13[%c0_38, %c0_39], %108 {strides = array<i32>} : memref<32x16xf32, #tpu.memory_space<vmem>>, vector<32x16xf32>,
    } else {
    }
    %c0_i32_3 = arith.constant 0 : i32
    %10 = arith.cmpi eq, %arg1, %c0_i32_3 : i32
    %11 = arith.extui %10 : i1 to i32
    %c0_i32_4 = arith.constant 0 : i32
    %12 = arith.cmpi ne, %11, %c0_i32_4 : i32
    scf.if %12 {
      %c0 = arith.constant 0 : index
      %c0_5 = arith.constant 0 : index
      %13 = vector.load %arg12[%c0, %c0_5] : memref<32x2xf32, #tpu.memory_space<vmem>>, vector<32x2xf32>
      %cst = arith.constant 9.99999968E-21 : f32
      %14 = vector.broadcast %cst : f32 to vector<32x2xf32>
      %15 = arith.maximumf %13, %14 : vector<32x2xf32>
      %c0_6 = arith.constant 0 : index
      %c0_7 = arith.constant 0 : index
      %16 = vector.load %arg13[%c0_6, %c0_7] : memref<32x16xf32, #tpu.memory_space<vmem>>, vector<32x16xf32>
      %17 = vector.extract_strided_slice %15 {offsets = [0, 0], sizes = [32, 1], strides = [1, 1]} : vector<32x2xf32> to vector<32x1xf32>
      %18 = tpu.reciprocal %17 {approx = true} : vector<32x1xf32> -> vector<32x1xf32>
      %19 = vector.extract_strided_slice %16 {offsets = [0, 0], sizes = [32, 8], strides = [1, 1]} : vector<32x16xf32> to vector<32x8xf32>
      %20 = vector.broadcast %18 : vector<32x1xf32> to vector<32x8xf32>
      %21 = arith.mulf %19, %20 : vector<32x8xf32>
      %22 = vector.extract_strided_slice %15 {offsets = [0, 1], sizes = [32, 1], strides = [1, 1]} : vector<32x2xf32> to vector<32x1xf32>
      %23 = tpu.reciprocal %22 {approx = true} : vector<32x1xf32> -> vector<32x1xf32>
      %24 = vector.extract_strided_slice %16 {offsets = [0, 8], sizes = [32, 8], strides = [1, 1]} : vector<32x16xf32> to vector<32x8xf32>
      %25 = vector.broadcast %23 : vector<32x1xf32> to vector<32x8xf32>
      %26 = arith.mulf %24, %25 : vector<32x8xf32>
      %27 = tpu.concatenate %21, %26 in 1 : vector<32x8xf32>, vector<32x8xf32> -> vector<32x16xf32>
      %c0_8 = arith.constant 0 : index
      %c0_9 = arith.constant 0 : index
      %28 = vector.load %arg8[%c0_8, %c0_9] : memref<1x16xf32, #tpu.memory_space<vmem>>, vector<1x16xf32>
      %29 = vector.broadcast %28 : vector<1x16xf32> to vector<32x16xf32>
      %30 = arith.addf %27, %29 : vector<32x16xf32>
      %cst_10 = arith.constant 0.000000e+00 : f32
      %31 = vector.broadcast %cst_10 : f32 to vector<32x16xf32>
      %32 = arith.maximumf %30, %31 : vector<32x16xf32>
      %33 = arith.truncf %32 : vector<32x16xf32> to vector<32x16xbf16>
      %c0_11 = arith.constant 0 : index
      %c0_12 = arith.constant 0 : index
      %34 = vector.load %arg9[%c0_11, %c0_12] : memref<32x16xbf16, #tpu.memory_space<vmem>>, vector<32x16xbf16>
      tpu.vector_store %arg9[%c0_11, %c0_12], %33 {strides = array<i32>} : memref<32x16xbf16, #tpu.memory_space<vmem>>, vector<32x16xbf16>,
    } else {
    }
    return
  }
  func.func @transform_0(%arg0: i32, %arg1: i32, %arg2: memref<1xi32, #tpu.memory_space<smem>>) -> (i32, i32) {
    %c0_i32 = arith.constant 0 : i32
    %c0_i32_0 = arith.constant 0 : i32
    return %arg1, %c0_i32 : i32, i32
  }
  func.func @transform_1(%arg0: i32, %arg1: i32, %arg2: memref<1xi32, #tpu.memory_space<smem>>) -> (i32, i32) {
    %c0_i32 = arith.constant 0 : i32
    %c0_i32_0 = arith.constant 0 : i32
    return %arg0, %c0_i32 : i32, i32
  }
  func.func @transform_2(%arg0: i32, %arg1: i32, %arg2: memref<1xi32, #tpu.memory_space<smem>>) -> (i32, i32) {
    %c0_i32 = arith.constant 0 : i32
    return %arg0, %arg1 : i32, i32
  }
  func.func @transform_3(%arg0: i32, %arg1: i32, %arg2: memref<1xi32, #tpu.memory_space<smem>>) -> (i32, i32) {
    %c0_i32 = arith.constant 0 : i32
    %c0_i32_0 = arith.constant 0 : i32
    %c0_i32_1 = arith.constant 0 : i32
    return %c0_i32, %c0_i32_0 : i32, i32
  }
  func.func @transform_4(%arg0: i32, %arg1: i32, %arg2: memref<1xi32, #tpu.memory_space<smem>>) -> (i32, i32) {
    %c0_i32 = arith.constant 0 : i32
    %c0_i32_0 = arith.constant 0 : i32
    %c0_i32_1 = arith.constant 0 : i32
    return %c0_i32, %c0_i32_0 : i32, i32
  }
  func.func @transform_5(%arg0: i32, %arg1: i32, %arg2: memref<1xi32, #tpu.memory_space<smem>>) -> (i32, i32) {
    %c0_i32 = arith.constant 0 : i32
    %c0_i32_0 = arith.constant 0 : i32
    %c0_i32_1 = arith.constant 0 : i32
    return %c0_i32, %c0_i32_0 : i32, i32
  }
  func.func @transform_6(%arg0: i32, %arg1: i32, %arg2: memref<1xi32, #tpu.memory_space<smem>>) -> (i32, i32) {
    %c0_i32 = arith.constant 0 : i32
    %c0_i32_0 = arith.constant 0 : i32
    return %arg0, %c0_i32 : i32, i32
  }
}

module attributes {stable_mosaic.version = 11 : i64} {
  func.func @_gat_layer_kernel(%arg0: i32, %arg1: i32, %arg2: memref<1xi32, #tpu.memory_space<smem>>, %arg3: memref<32x16xbf16, #tpu.memory_space<vmem>>, %arg4: memref<16x16xbf16, #tpu.memory_space<vmem>>, %arg5: memref<16x32xi8, #tpu.memory_space<vmem>>, %arg6: memref<16x10xbf16, #tpu.memory_space<vmem>>, %arg7: memref<16x2xbf16, #tpu.memory_space<vmem>>, %arg8: memref<1x8xf32, #tpu.memory_space<vmem>>, %arg9: memref<16x4xf32, #tpu.memory_space<vmem>>, %arg10: memref<16x2xf32, #tpu.memory_space<vmem>>, %arg11: memref<16x2xf32, #tpu.memory_space<vmem>>, %arg12: memref<16x2xf32, #tpu.memory_space<vmem>>, %arg13: memref<16x8xf32, #tpu.memory_space<vmem>>) attributes {dimension_semantics = [#tpu.dimension_semantics<parallel>, #tpu.dimension_semantics<arbitrary>], iteration_bounds = array<i64: 1, 1>, scalar_prefetch = 1 : i64, scratch_operands = 4 : i64, tpu.core_type = #tpu.core_type<tc>, window_params = [{transform_indices = @transform_0, window_bounds = array<i64: 32, 16>}, {transform_indices = @transform_1, window_bounds = array<i64: 16, 16>}, {transform_indices = @transform_2, window_bounds = array<i64: 16, 32>}, {pipeline_mode = #tpu.pipeline_mode<synchronous>, transform_indices = @transform_3, window_bounds = array<i64: 16, 10>}, {pipeline_mode = #tpu.pipeline_mode<synchronous>, transform_indices = @transform_4, window_bounds = array<i64: 16, 2>}, {pipeline_mode = #tpu.pipeline_mode<synchronous>, transform_indices = @transform_5, window_bounds = array<i64: 1, 8>}, {transform_indices = @transform_6, window_bounds = array<i64: 16, 4>}]} {
    %c0_i32 = arith.constant 0 : i32
    %0 = arith.cmpi eq, %arg1, %c0_i32 : i32
    %1 = arith.extui %0 : i1 to i32
    %c0_i32_0 = arith.constant 0 : i32
    %2 = arith.cmpi ne, %1, %c0_i32_0 : i32
    scf.if %2 {
      %c0 = arith.constant 0 : index
      %c0_5 = arith.constant 0 : index
      %13 = vector.load %arg4[%c0, %c0_5] : memref<16x16xbf16, #tpu.memory_space<vmem>>, vector<16x16xbf16>
      %c0_6 = arith.constant 0 : index
      %c0_7 = arith.constant 0 : index
      %14 = vector.load %arg7[%c0_6, %c0_7] : memref<16x2xbf16, #tpu.memory_space<vmem>>, vector<16x2xbf16>
      %cst = arith.constant dense<0.000000e+00> : vector<16x2xf32>
      %15 = tpu.matmul %13, %14, %cst {dimension_numbers = #tpu.dot_dimension_numbers<[1], [0], [0], [1], [0, 0, 1, 1], [], []>} : vector<16x16xbf16>, vector<16x2xbf16>, vector<16x2xf32> -> vector<16x2xf32>
      %c0_8 = arith.constant 0 : index
      %c0_9 = arith.constant 0 : index
      %16 = vector.load %arg10[%c0_8, %c0_9] : memref<16x2xf32, #tpu.memory_space<vmem>>, vector<16x2xf32>
      tpu.vector_store %arg10[%c0_8, %c0_9], %15 {strides = array<i32>} : memref<16x2xf32, #tpu.memory_space<vmem>>, vector<16x2xf32>,
      %cst_10 = arith.constant -1.000000e+30 : f32
      %17 = vector.broadcast %cst_10 : f32 to vector<16x2xf32>
      %c0_11 = arith.constant 0 : index
      %c0_12 = arith.constant 0 : index
      %18 = vector.load %arg11[%c0_11, %c0_12] : memref<16x2xf32, #tpu.memory_space<vmem>>, vector<16x2xf32>
      tpu.vector_store %arg11[%c0_11, %c0_12], %17 {strides = array<i32>} : memref<16x2xf32, #tpu.memory_space<vmem>>, vector<16x2xf32>,
      %cst_13 = arith.constant 0.000000e+00 : f32
      %19 = vector.broadcast %cst_13 : f32 to vector<16x2xf32>
      %c0_14 = arith.constant 0 : index
      %c0_15 = arith.constant 0 : index
      %20 = vector.load %arg12[%c0_14, %c0_15] : memref<16x2xf32, #tpu.memory_space<vmem>>, vector<16x2xf32>
      tpu.vector_store %arg12[%c0_14, %c0_15], %19 {strides = array<i32>} : memref<16x2xf32, #tpu.memory_space<vmem>>, vector<16x2xf32>,
      %cst_16 = arith.constant 0.000000e+00 : f32
      %21 = vector.broadcast %cst_16 : f32 to vector<16x8xf32>
      %c0_17 = arith.constant 0 : index
      %c0_18 = arith.constant 0 : index
      %22 = vector.load %arg13[%c0_17, %c0_18] : memref<16x8xf32, #tpu.memory_space<vmem>>, vector<16x8xf32>
      tpu.vector_store %arg13[%c0_17, %c0_18], %21 {strides = array<i32>} : memref<16x8xf32, #tpu.memory_space<vmem>>, vector<16x8xf32>,
    } else {
    }
    %c1_i32 = arith.constant 1 : i32
    %3 = arith.muli %arg0, %c1_i32 : i32
    %4 = arith.addi %3, %arg1 : i32
    %5 = arith.index_cast %4 : i32 to index
    %6 = memref.load %arg2[%5] : memref<1xi32, #tpu.memory_space<smem>>
    %c0_i32_1 = arith.constant 0 : i32
    %7 = arith.cmpi sgt, %6, %c0_i32_1 : i32
    %8 = arith.extui %7 : i1 to i32
    %c0_i32_2 = arith.constant 0 : i32
    %9 = arith.cmpi ne, %8, %c0_i32_2 : i32
    scf.if %9 {
      %c0 = arith.constant 0 : index
      %c0_5 = arith.constant 0 : index
      %13 = vector.load %arg3[%c0, %c0_5] : memref<32x16xbf16, #tpu.memory_space<vmem>>, vector<32x16xbf16>
      %c0_6 = arith.constant 0 : index
      %c0_7 = arith.constant 0 : index
      %14 = vector.load %arg6[%c0_6, %c0_7] : memref<16x10xbf16, #tpu.memory_space<vmem>>, vector<16x10xbf16>
      %cst = arith.constant dense<0.000000e+00> : vector<32x10xf32>
      %15 = tpu.matmul %13, %14, %cst {dimension_numbers = #tpu.dot_dimension_numbers<[1], [0], [0], [1], [0, 0, 1, 1], [], []>} : vector<32x16xbf16>, vector<16x10xbf16>, vector<32x10xf32> -> vector<32x10xf32>
      %16 = vector.extract_strided_slice %15 {offsets = [0, 0], sizes = [32, 8], strides = [1, 1]} : vector<32x10xf32> to vector<32x8xf32>
      %17 = arith.truncf %16 : vector<32x8xf32> to vector<32x8xbf16>
      %18 = vector.extract_strided_slice %15 {offsets = [0, 8], sizes = [32, 2], strides = [1, 1]} : vector<32x10xf32> to vector<32x2xf32>
      %19 = tpu.iota {dimensions = array<i32: 0>} : vector<2x2xi32>
      %20 = tpu.iota {dimensions = array<i32: 1>} : vector<2x2xi32>
      %21 = arith.cmpi eq, %19, %20 : vector<2x2xi32>
      %22 = arith.extui %21 : vector<2x2xi1> to vector<2x2xi32>
      %23 = arith.sitofp %22 : vector<2x2xi32> to vector<2x2xf32>
      %cst_8 = arith.constant dense<0.000000e+00> : vector<2x32xf32>
      %24 = tpu.matmul %23, %18, %cst_8 {dimension_numbers = #tpu.dot_dimension_numbers<[1], [1], [0], [0], [0, 0, 1, 0], [], []>} : vector<2x2xf32>, vector<32x2xf32>, vector<2x32xf32> -> vector<2x32xf32>
      %c0_9 = arith.constant 0 : index
      %c0_10 = arith.constant 0 : index
      %25 = vector.load %arg5[%c0_9, %c0_10] : memref<16x32xi8, #tpu.memory_space<vmem>>, vector<16x32xi8>
      %26 = arith.sitofp %25 : vector<16x32xi8> to vector<16x32xf32>
      %cst_11 = arith.constant 0.000000e+00 : f32
      %27 = vector.broadcast %cst_11 : f32 to vector<16x32xf32>
      %28 = arith.cmpf ogt, %26, %27 : vector<16x32xf32>
      %c0_12 = arith.constant 0 : index
      %c0_13 = arith.constant 0 : index
      %29 = vector.load %arg10[%c0_12, %c0_13] : memref<16x2xf32, #tpu.memory_space<vmem>>, vector<16x2xf32>
      %c0_14 = arith.constant 0 : index
      %c0_15 = arith.constant 0 : index
      %30 = vector.load %arg11[%c0_14, %c0_15] : memref<16x2xf32, #tpu.memory_space<vmem>>, vector<16x2xf32>
      %c0_16 = arith.constant 0 : index
      %c0_17 = arith.constant 0 : index
      %31 = vector.load %arg12[%c0_16, %c0_17] : memref<16x2xf32, #tpu.memory_space<vmem>>, vector<16x2xf32>
      %c0_18 = arith.constant 0 : index
      %c0_19 = arith.constant 0 : index
      %32 = vector.load %arg13[%c0_18, %c0_19] : memref<16x8xf32, #tpu.memory_space<vmem>>, vector<16x8xf32>
      %33 = vector.extract_strided_slice %29 {offsets = [0, 0], sizes = [16, 1], strides = [1, 1]} : vector<16x2xf32> to vector<16x1xf32>
      %34 = vector.extract_strided_slice %24 {offsets = [0, 0], sizes = [1, 32], strides = [1, 1]} : vector<2x32xf32> to vector<1x32xf32>
      %35 = vector.broadcast %33 : vector<16x1xf32> to vector<16x32xf32>
      %36 = vector.broadcast %34 : vector<1x32xf32> to vector<16x32xf32>
      %37 = arith.addf %35, %36 : vector<16x32xf32>
      %cst_20 = arith.constant 0.000000e+00 : f32
      %38 = vector.broadcast %cst_20 : f32 to vector<16x32xf32>
      %39 = arith.cmpf ogt, %37, %38 : vector<16x32xf32>
      %cst_21 = arith.constant 2.000000e-01 : f32
      %40 = vector.broadcast %cst_21 : f32 to vector<16x32xf32>
      %41 = arith.mulf %40, %37 : vector<16x32xf32>
      %42 = arith.select %39, %37, %41 : vector<16x32xi1>, vector<16x32xf32>
      %cst_22 = arith.constant -1.000000e+30 : f32
      %43 = vector.broadcast %cst_22 : f32 to vector<16x32xf32>
      %44 = arith.select %28, %42, %43 : vector<16x32xi1>, vector<16x32xf32>
      %45 = vector.extract_strided_slice %30 {offsets = [0, 0], sizes = [16, 1], strides = [1, 1]} : vector<16x2xf32> to vector<16x1xf32>
      %cst_23 = arith.constant dense<0xFF800000> : vector<16xf32>
      %46 = vector.multi_reduction <maximumf>, %44, %cst_23 [1] : vector<16x32xf32> to vector<16xf32>
      %47 = vector.shape_cast %46 : vector<16xf32> to vector<16x1xf32>
      %48 = arith.maximumf %45, %47 : vector<16x1xf32>
      %49 = arith.subf %45, %48 : vector<16x1xf32>
      %50 = math.exp %49 : vector<16x1xf32>
      %51 = vector.broadcast %48 : vector<16x1xf32> to vector<16x32xf32>
      %52 = arith.subf %44, %51 : vector<16x32xf32>
      %53 = math.exp %52 : vector<16x32xf32>
      %cst_24 = arith.constant 0.000000e+00 : f32
      %54 = vector.broadcast %cst_24 : f32 to vector<16x32xf32>
      %55 = arith.select %28, %53, %54 : vector<16x32xi1>, vector<16x32xf32>
      %56 = vector.extract_strided_slice %31 {offsets = [0, 0], sizes = [16, 1], strides = [1, 1]} : vector<16x2xf32> to vector<16x1xf32>
      %57 = arith.mulf %50, %56 : vector<16x1xf32>
      %cst_25 = arith.constant dense<0.000000e+00> : vector<16xf32>
      %58 = vector.multi_reduction <add>, %55, %cst_25 [1] : vector<16x32xf32> to vector<16xf32>
      %59 = vector.shape_cast %58 : vector<16xf32> to vector<16x1xf32>
      %60 = arith.addf %57, %59 : vector<16x1xf32>
      %61 = vector.extract_strided_slice %32 {offsets = [0, 0], sizes = [16, 4], strides = [1, 1]} : vector<16x8xf32> to vector<16x4xf32>
      %62 = vector.broadcast %50 : vector<16x1xf32> to vector<16x4xf32>
      %63 = arith.mulf %62, %61 : vector<16x4xf32>
      %64 = arith.truncf %55 : vector<16x32xf32> to vector<16x32xbf16>
      %65 = vector.extract_strided_slice %17 {offsets = [0, 0], sizes = [32, 4], strides = [1, 1]} : vector<32x8xbf16> to vector<32x4xbf16>
      %cst_26 = arith.constant dense<0.000000e+00> : vector<16x4xf32>
      %66 = tpu.matmul %64, %65, %cst_26 {dimension_numbers = #tpu.dot_dimension_numbers<[1], [0], [0], [1], [0, 0, 1, 1], [], []>} : vector<16x32xbf16>, vector<32x4xbf16>, vector<16x4xf32> -> vector<16x4xf32>
      %67 = arith.addf %63, %66 : vector<16x4xf32>
      %68 = vector.extract_strided_slice %29 {offsets = [0, 1], sizes = [16, 1], strides = [1, 1]} : vector<16x2xf32> to vector<16x1xf32>
      %69 = vector.extract_strided_slice %24 {offsets = [1, 0], sizes = [1, 32], strides = [1, 1]} : vector<2x32xf32> to vector<1x32xf32>
      %70 = vector.broadcast %68 : vector<16x1xf32> to vector<16x32xf32>
      %71 = vector.broadcast %69 : vector<1x32xf32> to vector<16x32xf32>
      %72 = arith.addf %70, %71 : vector<16x32xf32>
      %cst_27 = arith.constant 0.000000e+00 : f32
      %73 = vector.broadcast %cst_27 : f32 to vector<16x32xf32>
      %74 = arith.cmpf ogt, %72, %73 : vector<16x32xf32>
      %cst_28 = arith.constant 2.000000e-01 : f32
      %75 = vector.broadcast %cst_28 : f32 to vector<16x32xf32>
      %76 = arith.mulf %75, %72 : vector<16x32xf32>
      %77 = arith.select %74, %72, %76 : vector<16x32xi1>, vector<16x32xf32>
      %cst_29 = arith.constant -1.000000e+30 : f32
      %78 = vector.broadcast %cst_29 : f32 to vector<16x32xf32>
      %79 = arith.select %28, %77, %78 : vector<16x32xi1>, vector<16x32xf32>
      %80 = vector.extract_strided_slice %30 {offsets = [0, 1], sizes = [16, 1], strides = [1, 1]} : vector<16x2xf32> to vector<16x1xf32>
      %cst_30 = arith.constant dense<0xFF800000> : vector<16xf32>
      %81 = vector.multi_reduction <maximumf>, %79, %cst_30 [1] : vector<16x32xf32> to vector<16xf32>
      %82 = vector.shape_cast %81 : vector<16xf32> to vector<16x1xf32>
      %83 = arith.maximumf %80, %82 : vector<16x1xf32>
      %84 = arith.subf %80, %83 : vector<16x1xf32>
      %85 = math.exp %84 : vector<16x1xf32>
      %86 = vector.broadcast %83 : vector<16x1xf32> to vector<16x32xf32>
      %87 = arith.subf %79, %86 : vector<16x32xf32>
      %88 = math.exp %87 : vector<16x32xf32>
      %cst_31 = arith.constant 0.000000e+00 : f32
      %89 = vector.broadcast %cst_31 : f32 to vector<16x32xf32>
      %90 = arith.select %28, %88, %89 : vector<16x32xi1>, vector<16x32xf32>
      %91 = vector.extract_strided_slice %31 {offsets = [0, 1], sizes = [16, 1], strides = [1, 1]} : vector<16x2xf32> to vector<16x1xf32>
      %92 = arith.mulf %85, %91 : vector<16x1xf32>
      %cst_32 = arith.constant dense<0.000000e+00> : vector<16xf32>
      %93 = vector.multi_reduction <add>, %90, %cst_32 [1] : vector<16x32xf32> to vector<16xf32>
      %94 = vector.shape_cast %93 : vector<16xf32> to vector<16x1xf32>
      %95 = arith.addf %92, %94 : vector<16x1xf32>
      %96 = vector.extract_strided_slice %32 {offsets = [0, 4], sizes = [16, 4], strides = [1, 1]} : vector<16x8xf32> to vector<16x4xf32>
      %97 = vector.broadcast %85 : vector<16x1xf32> to vector<16x4xf32>
      %98 = arith.mulf %97, %96 : vector<16x4xf32>
      %99 = arith.truncf %90 : vector<16x32xf32> to vector<16x32xbf16>
      %100 = vector.extract_strided_slice %17 {offsets = [0, 4], sizes = [32, 4], strides = [1, 1]} : vector<32x8xbf16> to vector<32x4xbf16>
      %cst_33 = arith.constant dense<0.000000e+00> : vector<16x4xf32>
      %101 = tpu.matmul %99, %100, %cst_33 {dimension_numbers = #tpu.dot_dimension_numbers<[1], [0], [0], [1], [0, 0, 1, 1], [], []>} : vector<16x32xbf16>, vector<32x4xbf16>, vector<16x4xf32> -> vector<16x4xf32>
      %102 = arith.addf %98, %101 : vector<16x4xf32>
      %103 = tpu.concatenate %48, %83 in 1 : vector<16x1xf32>, vector<16x1xf32> -> vector<16x2xf32>
      %c0_34 = arith.constant 0 : index
      %c0_35 = arith.constant 0 : index
      %104 = vector.load %arg11[%c0_34, %c0_35] : memref<16x2xf32, #tpu.memory_space<vmem>>, vector<16x2xf32>
      tpu.vector_store %arg11[%c0_34, %c0_35], %103 {strides = array<i32>} : memref<16x2xf32, #tpu.memory_space<vmem>>, vector<16x2xf32>,
      %105 = tpu.concatenate %60, %95 in 1 : vector<16x1xf32>, vector<16x1xf32> -> vector<16x2xf32>
      %c0_36 = arith.constant 0 : index
      %c0_37 = arith.constant 0 : index
      %106 = vector.load %arg12[%c0_36, %c0_37] : memref<16x2xf32, #tpu.memory_space<vmem>>, vector<16x2xf32>
      tpu.vector_store %arg12[%c0_36, %c0_37], %105 {strides = array<i32>} : memref<16x2xf32, #tpu.memory_space<vmem>>, vector<16x2xf32>,
      %107 = tpu.concatenate %67, %102 in 1 : vector<16x4xf32>, vector<16x4xf32> -> vector<16x8xf32>
      %c0_38 = arith.constant 0 : index
      %c0_39 = arith.constant 0 : index
      %108 = vector.load %arg13[%c0_38, %c0_39] : memref<16x8xf32, #tpu.memory_space<vmem>>, vector<16x8xf32>
      tpu.vector_store %arg13[%c0_38, %c0_39], %107 {strides = array<i32>} : memref<16x8xf32, #tpu.memory_space<vmem>>, vector<16x8xf32>,
    } else {
    }
    %c0_i32_3 = arith.constant 0 : i32
    %10 = arith.cmpi eq, %arg1, %c0_i32_3 : i32
    %11 = arith.extui %10 : i1 to i32
    %c0_i32_4 = arith.constant 0 : i32
    %12 = arith.cmpi ne, %11, %c0_i32_4 : i32
    scf.if %12 {
      %c0 = arith.constant 0 : index
      %c0_5 = arith.constant 0 : index
      %13 = vector.load %arg12[%c0, %c0_5] : memref<16x2xf32, #tpu.memory_space<vmem>>, vector<16x2xf32>
      %cst = arith.constant 9.99999968E-21 : f32
      %14 = vector.broadcast %cst : f32 to vector<16x2xf32>
      %15 = arith.maximumf %13, %14 : vector<16x2xf32>
      %c0_6 = arith.constant 0 : index
      %c0_7 = arith.constant 0 : index
      %16 = vector.load %arg13[%c0_6, %c0_7] : memref<16x8xf32, #tpu.memory_space<vmem>>, vector<16x8xf32>
      %17 = vector.extract_strided_slice %15 {offsets = [0, 0], sizes = [16, 1], strides = [1, 1]} : vector<16x2xf32> to vector<16x1xf32>
      %18 = tpu.reciprocal %17 {approx = true} : vector<16x1xf32> -> vector<16x1xf32>
      %19 = vector.extract_strided_slice %16 {offsets = [0, 0], sizes = [16, 4], strides = [1, 1]} : vector<16x8xf32> to vector<16x4xf32>
      %20 = vector.broadcast %18 : vector<16x1xf32> to vector<16x4xf32>
      %21 = arith.mulf %19, %20 : vector<16x4xf32>
      %22 = vector.extract_strided_slice %15 {offsets = [0, 1], sizes = [16, 1], strides = [1, 1]} : vector<16x2xf32> to vector<16x1xf32>
      %23 = tpu.reciprocal %22 {approx = true} : vector<16x1xf32> -> vector<16x1xf32>
      %24 = vector.extract_strided_slice %16 {offsets = [0, 4], sizes = [16, 4], strides = [1, 1]} : vector<16x8xf32> to vector<16x4xf32>
      %25 = vector.broadcast %23 : vector<16x1xf32> to vector<16x4xf32>
      %26 = arith.mulf %24, %25 : vector<16x4xf32>
      %27 = tpu.concatenate %21, %26 in 1 : vector<16x4xf32>, vector<16x4xf32> -> vector<16x8xf32>
      %c0_8 = arith.constant 0 : index
      %c0_9 = arith.constant 0 : index
      %28 = vector.load %arg8[%c0_8, %c0_9] : memref<1x8xf32, #tpu.memory_space<vmem>>, vector<1x8xf32>
      %29 = vector.broadcast %28 : vector<1x8xf32> to vector<16x8xf32>
      %30 = arith.addf %27, %29 : vector<16x8xf32>
      %31 = vector.extract_strided_slice %30 {offsets = [0, 0], sizes = [16, 4], strides = [1, 1]} : vector<16x8xf32> to vector<16x4xf32>
      %32 = vector.extract_strided_slice %30 {offsets = [0, 4], sizes = [16, 4], strides = [1, 1]} : vector<16x8xf32> to vector<16x4xf32>
      %33 = arith.addf %31, %32 : vector<16x4xf32>
      %cst_10 = arith.constant 5.000000e-01 : f32
      %34 = vector.broadcast %cst_10 : f32 to vector<16x4xf32>
      %35 = arith.mulf %33, %34 : vector<16x4xf32>
      %cst_11 = arith.constant dense<0xFF800000> : vector<16xf32>
      %36 = vector.multi_reduction <maximumf>, %35, %cst_11 [1] : vector<16x4xf32> to vector<16xf32>
      %37 = vector.shape_cast %36 : vector<16xf32> to vector<16x1xf32>
      %38 = vector.broadcast %37 : vector<16x1xf32> to vector<16x4xf32>
      %39 = arith.subf %35, %38 : vector<16x4xf32>
      %40 = math.exp %39 : vector<16x4xf32>
      %cst_12 = arith.constant dense<0.000000e+00> : vector<16xf32>
      %41 = vector.multi_reduction <add>, %40, %cst_12 [1] : vector<16x4xf32> to vector<16xf32>
      %42 = vector.shape_cast %41 : vector<16xf32> to vector<16x1xf32>
      %43 = math.log %42 : vector<16x1xf32>
      %44 = vector.broadcast %43 : vector<16x1xf32> to vector<16x4xf32>
      %45 = arith.subf %39, %44 : vector<16x4xf32>
      %c0_13 = arith.constant 0 : index
      %c0_14 = arith.constant 0 : index
      %46 = vector.load %arg9[%c0_13, %c0_14] : memref<16x4xf32, #tpu.memory_space<vmem>>, vector<16x4xf32>
      tpu.vector_store %arg9[%c0_13, %c0_14], %45 {strides = array<i32>} : memref<16x4xf32, #tpu.memory_space<vmem>>, vector<16x4xf32>,
    } else {
    }
    return
  }
  func.func @transform_0(%arg0: i32, %arg1: i32, %arg2: memref<1xi32, #tpu.memory_space<smem>>) -> (i32, i32) {
    %c0_i32 = arith.constant 0 : i32
    %c0_i32_0 = arith.constant 0 : i32
    return %arg1, %c0_i32 : i32, i32
  }
  func.func @transform_1(%arg0: i32, %arg1: i32, %arg2: memref<1xi32, #tpu.memory_space<smem>>) -> (i32, i32) {
    %c0_i32 = arith.constant 0 : i32
    %c0_i32_0 = arith.constant 0 : i32
    return %arg0, %c0_i32 : i32, i32
  }
  func.func @transform_2(%arg0: i32, %arg1: i32, %arg2: memref<1xi32, #tpu.memory_space<smem>>) -> (i32, i32) {
    %c0_i32 = arith.constant 0 : i32
    return %arg0, %arg1 : i32, i32
  }
  func.func @transform_3(%arg0: i32, %arg1: i32, %arg2: memref<1xi32, #tpu.memory_space<smem>>) -> (i32, i32) {
    %c0_i32 = arith.constant 0 : i32
    %c0_i32_0 = arith.constant 0 : i32
    %c0_i32_1 = arith.constant 0 : i32
    return %c0_i32, %c0_i32_0 : i32, i32
  }
  func.func @transform_4(%arg0: i32, %arg1: i32, %arg2: memref<1xi32, #tpu.memory_space<smem>>) -> (i32, i32) {
    %c0_i32 = arith.constant 0 : i32
    %c0_i32_0 = arith.constant 0 : i32
    %c0_i32_1 = arith.constant 0 : i32
    return %c0_i32, %c0_i32_0 : i32, i32
  }
  func.func @transform_5(%arg0: i32, %arg1: i32, %arg2: memref<1xi32, #tpu.memory_space<smem>>) -> (i32, i32) {
    %c0_i32 = arith.constant 0 : i32
    %c0_i32_0 = arith.constant 0 : i32
    %c0_i32_1 = arith.constant 0 : i32
    return %c0_i32, %c0_i32_0 : i32, i32
  }
  func.func @transform_6(%arg0: i32, %arg1: i32, %arg2: memref<1xi32, #tpu.memory_space<smem>>) -> (i32, i32) {
    %c0_i32 = arith.constant 0 : i32
    %c0_i32_0 = arith.constant 0 : i32
    return %arg0, %c0_i32 : i32, i32
  }
}

</mosaic_0001>

<bundles_post_ra>
// kernel: gat_forward.3
= control target key start
LH: loop header
LB: loop body
LE: loop exit
PB: predicated region body
PF: predicated region fallthrough
CT: control target
= control target key end

     0   :  { %13 = vsyncpa [#allocation9], 0  ;;  %s1391_s0 = inlined_call_operand.<no memory space> [shape: s32[1], index: 0, kind: input, shape index: {}]   ;;  %s1392_s1 = inlined_call_operand.hbm [shape: bf16[32,16], index: 1, kind: input, shape index: {}, may-alias: {1,2}]   ;;  %s1393_s2 = inlined_call_operand.hbm [shape: bf16[32,16], index: 2, kind: input, shape index: {}, may-alias: {1,2}]   ;;  %s1394_s3 = inlined_call_operand.hbm [shape: s8[16,32], index: 3, kind: input, shape index: {}]   ;;  %s1395_s4 = inlined_call_operand.hbm [shape: bf16[16,10], index: 4, kind: input, shape index: {}]   ;;  %s1396_s5 = inlined_call_operand.hbm [shape: bf16[16,2], index: 5, kind: input, shape index: {}]   ;;  %s1397_s6 = inlined_call_operand.hbm [shape: f32[1,8], index: 6, kind: input, shape index: {}]   ;;  %s1398_s7 = inlined_call_operand.hbm [shape: f32[16,4], index: 7, kind: output, shape index: {}]  }
   0x1   :  { %14 = vsyncpa [#allocation12], 0 }
   0x2   :  { %15 = vsyncpa [#allocation15], 0 }
   0x3   :  { %16 = vsyncpa [#allocation18], 0 }
   0x4   :  { %17 = vsyncpa [#allocation10], 0  ;;  %s1098_s24 = smov [#allocation11]   ;;  %s1099_s26 = smov [#allocation14]  }
   0x5   :  { %s35_s25 = sshll.u32 %s1098_s24, 4  ;;  %s59_s27 = sshll.u32 %s1099_s26, 4  ;;  %s36_s25 = int_to_ptr.vmem [resolvable:$true] %s35_s25  ;;  %s1165_s27 = int_to_ptr.vmem [resolvable:$true] %s59_s27 }
   0x6   :  { %s934_s30 = scalar_lea.hbm %s1393_s2, 128  ;;  %s936_s12 = scalar_lea.hbm %s1393_s2, 256 }
   0x7   :  { %p935_p0 = scmp.ne.s32.totalorder %s1393_s2, %s934_s30  ;;  %p937_p1 = scmp.lt.u32.totalorder %s936_s12, %s934_s30 }
   0x8   :  { %p938_p2 = scmp.lt.u32.totalorder %s934_s30, %s1393_s2 }
   0xa   :  { %p939_p3 = por %p938_p2, %p937_p1 }
   0xc   :  { %p940_p4 = pnand %p939_p3, %p935_p0 }
   0xe   :  { %943 = shalt.err (!%p940_p4)
}
   0xf   :  { %s944_s15 = scalar_lea.vmem %s36_s25, 128  ;;  %p949_p6 = scmp.lt.s32.totalorder %s36_s25, %s36_s25 }
  0x10   :  { %p945_p5 = scmp.ne.s32.totalorder %s36_s25, %s944_s15  ;;  %p950_p7 = scmp.lt.s32.totalorder %s944_s15, %s944_s15 }
  0x12   :  { %p951_p8 = por %p950_p7, %p949_p6 }
  0x14   :  { %p952_p9 = pnand %p951_p8, %p945_p5 }
  0x16   :  { %955 = shalt.err (!%p952_p9)
}
  0x17   :  { %s1100_s16 = smov 64   ;;  %s1101_s17 = smov 4  }
  0x18   :  { %41 = dma.hbm_to_vmem [thread:$0]  %s1393_s2, 128, %s36_s25, [#allocation12], %s1100_s16, %s1100_s16, %s1101_s17  }
  0x19   :  { %s956_s22 = scalar_lea.hbm %s1395_s4, 128 }
  0x1a   :  { %p957_p10 = scmp.ne.s32.totalorder %s1395_s4, %s956_s22  ;;  %p960_p11 = scmp.lt.u32.totalorder %s956_s22, %s1395_s4 }
  0x1c   :  { %p962_p12 = pnand %p960_p11, %p957_p10 }
  0x1e   :  { %965 = shalt.err (!%p962_p12)
}
  0x1f   :  { %s966_s29 = scalar_lea.vmem %s1165_s27, 128  ;;  %p971_p0 = scmp.lt.s32.totalorder %s1165_s27, %s1165_s27 }
  0x20   :  { %p967_p13 = scmp.ne.s32.totalorder %s1165_s27, %s966_s29  ;;  %p972_p1 = scmp.lt.s32.totalorder %s966_s29, %s966_s29 }
  0x22   :  { %p973_p2 = por %p972_p1, %p971_p0 }
  0x24   :  { %p974_p3 = pnand %p973_p2, %p967_p13 }
  0x26   :  { %977 = shalt.err (!%p974_p3)
}
  0x27   :  { %65 = dma.hbm_to_vmem [thread:$0]  %s1395_s4, 128, %s1165_s27, [#allocation15], %s1100_s16, %s1100_s16, %s1101_s17  }
  0x28   :  { %s1102_s30 = smov [#allocation8]   ;;  %s1103_s9 = smov [#allocation13]  }
  0x29   :  { %s23_s8 = sshll.u32 %s1102_s30, 4  ;;  %s47_s10 = sshll.u32 %s1103_s9, 4  ;;  %s24_s8 = int_to_ptr.vmem [resolvable:$true] %s23_s8  ;;  %s1205_s10 = int_to_ptr.vmem [resolvable:$true] %s47_s10 }
  0x2a   :  { %s978_s13 = scalar_lea.hbm %s1392_s1, 256 }
  0x2b   :  { %p979_p4 = scmp.ne.s32.totalorder %s1392_s1, %s978_s13  ;;  %p982_p5 = scmp.lt.u32.totalorder %s978_s13, %s1392_s1 }
  0x2d   :  { %p984_p6 = pnand %p982_p5, %p979_p4 }
  0x2f   :  { %987 = shalt.err (!%p984_p6)
}
  0x30   :  { %s988_s4 = scalar_lea.vmem %s24_s8, 256  ;;  %p993_p8 = scmp.lt.s32.totalorder %s24_s8, %s24_s8 }
  0x31   :  { %p989_p7 = scmp.ne.s32.totalorder %s24_s8, %s988_s4  ;;  %p994_p9 = scmp.lt.s32.totalorder %s988_s4, %s988_s4 }
  0x33   :  { %p995_p10 = por %p994_p9, %p993_p8 }
  0x35   :  { %p996_p11 = pnand %p995_p10, %p989_p7 }
  0x37   :  { %999 = shalt.err (!%p996_p11)
}
  0x38   :  { %29 = dma.hbm_to_vmem [thread:$0]  %s1392_s1, 256, %s24_s8, [#allocation9], %s1100_s16, %s1100_s16, %s1101_s17  }
  0x39   :  { %s1000_s23 = scalar_lea.hbm %s1394_s3, 64 }
  0x3a   :  { %p1001_p12 = scmp.ne.s32.totalorder %s1394_s3, %s1000_s23  ;;  %p1004_p13 = scmp.lt.u32.totalorder %s1000_s23, %s1394_s3 }
  0x3c   :  { %p1006_p0 = pnand %p1004_p13, %p1001_p12 }
  0x3e   :  { %1009 = shalt.err (!%p1006_p0)
}
  0x3f   :  { %s1010_s2 = scalar_lea.vmem %s1205_s10, 64  ;;  %p1015_p2 = scmp.lt.s32.totalorder %s1205_s10, %s1205_s10 }
  0x40   :  { %p1011_p1 = scmp.ne.s32.totalorder %s1205_s10, %s1010_s2  ;;  %p1016_p3 = scmp.lt.s32.totalorder %s1010_s2, %s1010_s2 }
  0x42   :  { %p1017_p4 = por %p1016_p3, %p1015_p2 }
  0x44   :  { %p1018_p5 = pnand %p1017_p4, %p1011_p1 }
  0x46   :  { %1021 = shalt.err (!%p1018_p5)
}
  0x47   :  { %s1104_s1 = smov 32   ;;  %s1105_s25 = smov 2  }
  0x48   :  { %53 = dma.hbm_to_vmem [thread:$0]  %s1394_s3, 64, %s1205_s10, [#allocation12], %s1104_s1, %s1104_s1, %s1105_s25  }
  0x49   :  { %s1106_s9 = smov [#allocation16]   ;;  %s1107_s12 = smov [#allocation17]  }
  0x4a   :  { %s71_s11 = sshll.u32 %s1106_s9, 4  ;;  %s84_s13 = sshll.u32 %s1107_s12, 4  ;;  %s72_s11 = int_to_ptr.vmem [resolvable:$true] %s71_s11  ;;  %s85_s13 = int_to_ptr.vmem [resolvable:$true] %s84_s13 }
  0x4b   :  { %s1022_s18 = scalar_lea.hbm %s1396_s5, 128 }
  0x4c   :  { %p1023_p6 = scmp.ne.s32.totalorder %s1396_s5, %s1022_s18  ;;  %p1026_p7 = scmp.lt.u32.totalorder %s1022_s18, %s1396_s5 }
  0x4e   :  { %p1028_p8 = pnand %p1026_p7, %p1023_p6 }
  0x50   :  { %1031 = shalt.err (!%p1028_p8)
}
  0x51   :  { %s1032_s3 = scalar_lea.vmem %s72_s11, 128  ;;  %p1037_p10 = scmp.lt.s32.totalorder %s72_s11, %s72_s11 }
  0x52   :  { %p1033_p9 = scmp.ne.s32.totalorder %s72_s11, %s1032_s3  ;;  %p1038_p11 = scmp.lt.s32.totalorder %s1032_s3, %s1032_s3 }
  0x54   :  { %p1039_p12 = por %p1038_p11, %p1037_p10 }
  0x56   :  { %p1040_p13 = pnand %p1039_p12, %p1033_p9 }
  0x58   :  { %1043 = shalt.err (!%p1040_p13)
}
  0x59   :  { %77 = dma.hbm_to_vmem [thread:$0]  %s1396_s5, 128, %s72_s11, [#allocation15], %s1100_s16, %s1100_s16, %s1101_s17  }
  0x5a   :  { %s1044_s24 = scalar_lea.hbm %s1397_s6, 16 }
  0x5b   :  { %p1045_p0 = scmp.ne.s32.totalorder %s1397_s6, %s1044_s24  ;;  %p1048_p1 = scmp.lt.u32.totalorder %s1044_s24, %s1397_s6 }
  0x5d   :  { %p1050_p2 = pnand %p1048_p1, %p1045_p0 }
  0x5f   :  { %1053 = shalt.err (!%p1050_p2)
}
  0x60   :  { %s1054_s1 = scalar_lea.vmem %s85_s13, 16  ;;  %s1058_s25 = scalar_lea.vmem %s85_s13, 32 }
  0x61   :  { %p1055_p3 = scmp.ne.s32.totalorder %s85_s13, %s1054_s1  ;;  %p1059_p4 = scmp.lt.s32.totalorder %s85_s13, %s85_s13 }
  0x62   :  { %p1060_p5 = scmp.lt.s32.totalorder %s1058_s25, %s1054_s1 }
  0x64   :  { %p1061_p6 = por %p1060_p5, %p1059_p4 }
  0x66   :  { %p1062_p7 = pnand %p1061_p6, %p1055_p3 }
  0x68   :  { %1065 = shalt.err (!%p1062_p7)
}
  0x69   :  { %87 = dma.hbm_to_vmem [thread:$0]  %s1397_s6, 16, %s85_s13, [#allocation18]  }
  0x6a   :  { %1088 = dma.done.wait [#allocation9], 256  }
  0x6b   :  { %1089 = vsyncadd [#allocation9], 4294967040 }
  0x6c   :  { %1090 = dma.done.wait [#allocation12], 192  }
  0x6d   :  { %1091 = vsyncadd [#allocation12], 4294967104 }
  0x6e   :  { %1092 = dma.done.wait [#allocation15], 256  }
  0x6f   :  { %1093 = vsyncadd [#allocation15], 4294967040 }
  0x70   :  { %1094 = dma.done.wait [#allocation18], 16  }
  0x71   :  { %1095 = vsyncadd [#allocation18], 4294967280  ;;  %vm178_vm0 = vcmask 64512   ;;  %v1108_v0 = vmov 0.0   ;;  %vm1109_vm1 = vmmov 0   ;;  %v879_v1 = vld [vmem:[#allocation16] sm:$0xff]  }
  0x72   :  { %805 = vmatprep.subr.bf16.mxu0 %v1108_v0  ;;  %179 = vst.msk [vmem:[#allocation5] sm:$0xff] %vm178_vm0, %v1108_v0  ;;  %180 = vst.msk [vmem:[#allocation5 + $0x8] sm:$0xff] %vm178_vm0, %v1108_v0  ;;  %807 = vmatprep.mubr.msk.bf16.mxu0 %vm1109_vm1, %v1108_v0  ;;  %v880_v2 = vld [vmem:[#allocation11] sm:$0xff]   ;;  %vm126_vm2 = vcmask 130048   ;;  %vm171_vm3 = vcmask 15360   ;;  %p770_p8 = scmp.le.s32.totalorder %s1391_s0, 0 }
  0x73   :  { %806 = vmatpush3.bf16.msra.mxu0 %v879_v1  ;;  %176 = vst.msk [vmem:[#allocation4] sm:$0xff] %vm171_vm3, %v1108_v0  ;;  %177 = vst.msk [vmem:[#allocation4 + $0x8] sm:$0xff] %vm171_vm3, %v1108_v0  ;;  %v1110_v3 = vmov -1e+30   ;;  %v900_v8 = vld [vmem:[#allocation14] sm:$0xff] (!%p770_p8)   ;;  %v902_v10 = vld [vmem:[#allocation8 + $0x8] sm:$0xff] (!%p770_p8)   ;;  %v267_v30 = vlaneseq (!%p770_p8) }
  0x74   :  { %174 = vst.msk [vmem:[#allocation3] sm:$0xff] %vm171_vm3, %v1110_v3  ;;  %175 = vst.msk [vmem:[#allocation3 + $0x8] sm:$0xff] %vm171_vm3, %v1110_v3  ;;  %v901_v9 = vld [vmem:[#allocation8] sm:$0xff] (!%p770_p8)   ;;  %811 = vmatprep.subr.bf16.mxu1 (!%p770_p8), %v900_v8  ;;  %v1111_v11 = vmov (!%p770_p8), 0.0   ;;  %v1112_v12 = vmov (!%p770_p8), 0.0|0.0   ;;  %s1113_s0 = smov (!%p770_p8), 120  }
  0x75   :  { %812 = vmatpush3.bf16.msra.mxu1 (!%p770_p8), %v900_v8  ;;  %813 = vmatprep.mubr.msk.bf16.mxu1 (!%p770_p8), %vm126_vm2, %v901_v9  ;;  %vm1114_vm4 = vmmov (!%p770_p8), 0   ;;  %v1115_v22 = vmov (!%p770_p8), 0   ;;  %v1116_v23 = vmov (!%p770_p8), 1   ;;  %vm846_vm5 = vmpackc.low (!%p770_p8), %vm171_vm3, %vm171_vm3  ;;  %v268_v33 = vshrl.u32 (!%p770_p8), %v267_v30, 7  ;;  %v786_v39 = vld [vmem:[#allocation13] sm:$0xf] (!%p770_p8)  }
  0x76   :  { %808 = vmatmul.mubr.msk.bf16.vlgmr.msra.gmra.mrb[0].mxu0 %vm126_vm2, %v880_v2  ;;  %828 = vmatprep.subr.bf16.mxu0 (!%p770_p8), %v1111_v11  ;;  %v270_v34 = vand.u32 (!%p770_p8), 127, %v267_v30  ;;  %v788_v40 = vunpack.c.1.s8 (!%p770_p8), %v786_v39  ;;  %v787_v41 = vunpack.c.0.s8 (!%p770_p8), %v786_v39  ;;  %vm408_vm13 = vcmask (!%p770_p8), 261120   ;;  %s1117_s30 = smov (!%p770_p8), 124   ;;  %s1118_s8 = smov (!%p770_p8), 4  }
  0x77   :  { %844 = vmatprep.subr.bf16.mxu1 (!%p770_p8), %v1112_v12  ;;  %832 = vmatprep.mubr.msk.bf16.mxu0 (!%p770_p8), %vm1114_vm4, %v1111_v11  ;;  %v396_v42 = vsub.s32 (!%p770_p8), 0, %v268_v33  ;;  %v520_v43 = vsub.s32 (!%p770_p8), 1, %v268_v33  ;;  %vm649_vm14 = vcmask (!%p770_p8), 7168   ;;  %vm658_vm15 = vcmask (!%p770_p8), 31744  }
  0x78   :  { %814 = vmatmul.mubr.msk.bf16.vlgmr.msra.gmra.mrb[0].mxu1 (!%p770_p8), %vm126_vm2, %v902_v10  ;;  %891 = vset.pattern.permute.xlu1 (!%p770_p8), %v1115_v22  ;;  %vm271_vm6 = vcmp.eq.s32.totalorder (!%p770_p8), %v268_v33, %v270_v34  ;;  %v1302_v47 = vcvt.s32.f32 (!%p770_p8), %v788_v40  ;;  %v1304_v48 = vcvt.s32.f32 (!%p770_p8), %v787_v41 }
  0x79   :  { %825 = vmatprep.mubr.msk.f32.mxu1 (!%p770_p8), %vm1114_vm4, %v1111_v11  ;;  %892 = vset.pattern.permute.xlu0 (!%p770_p8), %v1116_v23  ;;  %v776_v36 = vsel (!%p770_p8), %vm271_vm6, 1.0, %v1111_v11 }
  0x7a   :  { %vm375_vm7 = vcmp.gt.f32.partialorder (!%p770_p8), %v1302_v47, 0.0  ;;  %vm374_vm8 = vcmp.gt.f32.partialorder (!%p770_p8), %v1304_v48, 0.0 }
  0x7b   :  { %v1320_v8 = vld [vmem:[#allocation3 + $0x8] sm:$0xff] (!%p770_p8)  ;;  %v378_v9 = vld [vmem:[#allocation3] sm:$0xff] (!%p770_p8) }
 0x146   :  { %186 = sbr.rel (%p770_p8) target bundleno = 1327 (0x52f), region = 57 }
 0x149   :  { %v164_v4 = vpop.f32.mrb[0].mxu0 }
 0x14a   :  { %172 = vst.msk [vmem:[#allocation2] sm:$0xff] %vm171_vm3, %v164_v4  ;;  %v809_v5 = vpop.f32.mrb[1].mxu0 }
 0x14b   :  { %v167_v6 = vpop.f32.mrb[2].mxu0  ;;  %v815_v13 = vpop.f32.mrb[0].mxu1 (!%p770_p8) }
 0x14c   :  { %173 = vst.msk [vmem:[#allocation2 + $0x8] sm:$0xff] %vm171_vm3, %v167_v6  ;;  %v810_v7 = vpop.f32.mrb[3].mxu0  ;;  %v250_v14 = vpop.f32.mrb[1].mxu1 (!%p770_p8) }
 0x14d   :  { %v816_v15 = vpop.f32.mrb[2].mxu1 }
 0x14e   :  { %v886_v16 = vpack.i.bf16 %v816_v15, %v815_v13  ;;  %v1281_v17 = vpack.c.bf16 %v816_v15, %v815_v13  ;;  %v253_v18 = vpop.f32.mrb[3].mxu1 }
 0x14f   :  { %v881_v19 = vpack.i.bf16 %v253_v18, %v250_v14  ;;  %v1283_v20 = vpack.c.bf16 %v253_v18, %v250_v14 }
 0x151   :  { %882 = vrot.lane.b32.xlu0 %v881_v19, %s1113_s0  ;;  %829 = vmatpush3.bf16.msra.mxu0 %v1283_v20  ;;  %v376_v21 = vld [vmem:[#allocation2] sm:$0xff] }
 0x152   :  { %830 = vmatprep.subr.bf16.mxu0 %v1111_v11  ;;  %386 = vperm.xlu1 %891, %v376_v21  }
 0x153   :  { %v377_v24 = vld [vmem:[#allocation2 + $0x8] sm:$0xff] }
 0x155   :  { %887 = vrot.lane.b32.xlu0 %v886_v16, %s1113_s0  ;;  %831 = vmatpush3.bf16.msra.mxu0 %v1281_v17 }
 0x156   :  { %836 = vmatprep.subr.bf16.mxu0 %v1111_v11  ;;  %391 = vperm.xlu1 %891, %v377_v24  }
 0x159   :  { %511 = vperm.xlu0 %892, %v376_v21  }
 0x15a   :  { %893 = vset.pattern.permute.xlu1 %v1116_v23 }
 0x15b   :  { %515 = vperm.xlu1 %893, %v377_v24  }
 0x15d   :  { %894 = vset.pattern.permute.xlu0 %v1115_v22 }
 0x15f   :  { %895 = vset.pattern.permute.xlu1 %v1115_v22 }
 0x1c3   :  { %v883_v25 = vpop.permute.xlu0 %882 }
 0x1c4   :  { %v885_v26 = vunpack.i.h.bf16 %v883_v25  ;;  %v884_v27 = vunpack.i.l.bf16 %v883_v25 }
 0x1c6   :  { %v845_v28 = vpack.c.bf16 %v885_v26, %v884_v27 }
 0x1c7   :  { %v888_v29 = vpop.permute.xlu0 %887 }
 0x1c8   :  { %847 = vmatpush3.bf16.xpose.msk.msra.mxu1 %vm846_vm5, %v845_v28  ;;  %v890_v31 = vunpack.i.h.bf16 %v888_v29  ;;  %v889_v32 = vunpack.i.l.bf16 %v888_v29 }
 0x1c9   :  { %848 = vmatprep.subr.bf16.mxu1 %v1112_v12 }
 0x1ca   :  { %v849_v35 = vpack.c.bf16 %v890_v31, %v889_v32 }
 0x1d0   :  { %851 = vmatpush3.bf16.xpose.msk.msra.mxu1 %vm846_vm5, %v849_v35 }
 0x1d1   :  { %v387_v37 = vpop.permute.xlu1 %386 }
 0x1d5   :  { %v392_v38 = vpop.permute.xlu1 %391 }
 0x1d7   :  { %826 = vmatmul.mubr.msk.f32.vlgmr.msra.gmra.mrb[4].mxu1 %vm171_vm3, %v776_v36 }
 0x1d8   :  { %v512_v46 = vpop.permute.xlu0 %511 }
 0x1da   :  { %v516_v44 = vpop.permute.xlu1 %515 }
 0x2aa   :  { %v364_v45 = vpop.f32.mrb[4].mxu1 }
 0x2ab   :  { %v397_v49 = vrot.slane %v364_v45, %v396_v42  ;;  %v521_v50 = vrot.slane %v364_v45, %v520_v43  ;;  %v827_v51 = vpop.f32.mrb[5].mxu1 }
 0x2ad   :  { %v398_v52 = vadd.f32 %v397_v49, %v387_v37  ;;  %v399_v53 = vadd.f32 %v397_v49, %v392_v38  ;;  %v523_v54 = vadd.f32 %v521_v50, %v516_v44  ;;  %v522_v55 = vadd.f32 %v521_v50, %v512_v46 }
 0x2af   :  { %v527_v56 = vmul.f32 0.2, %v523_v54  ;;  %v526_v57 = vmul.f32 0.2, %v522_v55  ;;  %vm401_vm9 = vcmp.gt.f32.partialorder %v399_v53, 0.0  ;;  %vm400_vm10 = vcmp.gt.f32.partialorder %v398_v52, 0.0 }
 0x2b0   :  { %v403_v58 = vmul.f32 0.2, %v399_v53  ;;  %v402_v59 = vmul.f32 0.2, %v398_v52  ;;  %vm524_vm11 = vcmp.gt.f32.partialorder %v522_v55, 0.0  ;;  %vm525_vm12 = vcmp.gt.f32.partialorder %v523_v54, 0.0 }
 0x2b1   :  { %v528_v62 = vsel %vm524_vm11, %v522_v55, %v526_v57  ;;  %v529_v63 = vsel %vm525_vm12, %v523_v54, %v527_v56 }
 0x2b2   :  { %v405_v60 = vsel %vm401_vm9, %v399_v53, %v403_v58  ;;  %v404_v61 = vsel %vm400_vm10, %v398_v52, %v402_v59  ;;  %v530_v4 = vsel %vm374_vm8, %v528_v62, -1e+30  ;;  %v531_v5 = vsel %vm375_vm7, %v529_v63, -1e+30 }
 0x2b3   :  { %v407_v0 = vsel %vm375_vm7, %v405_v60, -1e+30  ;;  %v406_v1 = vsel %vm374_vm8, %v404_v61, -1e+30  ;;  %v532_v6 = vsel %vm408_vm13, %v530_v4, -inf  ;;  %v535_v7 = vsel %vm408_vm13, %v531_v5, -inf }
 0x2b4   :  { %v412_v2 = vsel %vm408_vm13, %v407_v0, -inf  ;;  %v409_v3 = vsel %vm408_vm13, %v406_v1, -inf }
 0x2b5   :  { %413 = vmax.xlane.f32.xlu0 %v412_v2  ;;  %410 = vmax.xlane.f32.xlu1 %v409_v3  ;;  %v381_v3 = vld [vmem:[#allocation4 + $0x8] sm:$0xff] }
 0x2b9   :  { %533 = vmax.xlane.f32.xlu0 %v532_v6  ;;  %536 = vmax.xlane.f32.xlu1 %v535_v7 }
 0x342   :  { %v414_v10 = vpop.xlane.xlu0 %413  ;;  %v411_v12 = vpop.xlane.xlu1 %410 }
 0x343   :  { %v416_v13 = vmax.f32 %v1320_v8, %v414_v10  ;;  %v415_v14 = vmax.f32 %v378_v9, %v411_v12 }
 0x345   :  { %v418_v15 = vsub.f32 %v1320_v8, %v416_v13  ;;  %430 = vperm.xlu1 %895, %v416_v13   ;;  %425 = vperm.xlu0 %894, %v415_v14   ;;  %v417_v21 = vsub.f32 %v378_v9, %v415_v14 }
 0x346   :  { %v534_v16 = vpop.xlane.xlu0 %533  ;;  %v537_v18 = vpop.xlane.xlu1 %536 }
 0x347   :  { %v421_v19 = vmul.f32 1.442695, %v418_v15  ;;  %v538_v24 = vmax.f32 %v378_v9, %v534_v16  ;;  %v1325_v25 = vmax.f32 %v1320_v8, %v537_v18  ;;  %v419_v29 = vmul.f32 1.442695, %v417_v21  ;;  %v382_v16 = vld [vmem:[#allocation5] sm:$0xff] }
 0x349   :  { %903 = vpow2.f32 %v421_v19  ;;  %v650_v26 = vsel %vm649_vm14, %v415_v14, %v538_v24  ;;  %v541_v27 = vsub.f32 %v1320_v8, %v1325_v25  ;;  %896 = vset.pattern.permute.xlu1 %v1116_v23  ;;  %v651_v28 = vsel %vm649_vm14, %v416_v13, %v1325_v25 }
 0x34a   :  { %652 = vst.msk [vmem:[#allocation3] sm:$0xff] %vm171_vm3, %v650_v26  ;;  %548 = vperm.xlu1 %896, %v538_v24   ;;  %653 = vst.msk [vmem:[#allocation3 + $0x8] sm:$0xff] %vm171_vm3, %v651_v28  ;;  %v540_v30 = vsub.f32 %v378_v9, %v538_v24  ;;  %905 = vpow2.f32 %v419_v29 }
 0x34b   :  { %v544_v48 = vmul.f32 1.442695, %v541_v27 }
 0x34c   :  { %v542_v31 = vmul.f32 1.442695, %v540_v30 }
 0x34e   :  { %553 = vperm.xlu1 %896, %v1325_v25   ;;  %907 = vpow2.f32 %v542_v31 }
 0x352   :  { %589 = vrot.lane.b32.xlu1 %v1283_v20, %s1117_s30 }
 0x353   :  { %v1337_v32 = vpop.eup %903  ;;  %897 = vset.pattern.permute.xlu1 %v1115_v22 }
 0x354   :  { %458 = vperm.xlu0 %894, %v1337_v32   ;;  %v906_v33 = vpop.eup %905  ;;  %v442_v9 = vmul.f32 %v1337_v32, %v381_v3  ;;  %v383_v32 = vld [vmem:[#allocation5 + $0x8] sm:$0xff] }
 0x356   :  { %591 = vrot.lane.b32.xlu1 %v1281_v17, %s1117_s30 }
 0x358   :  { %899 = vset.pattern.permute.xlu0 %v1116_v23  ;;  %v908_v34 = vpop.eup %907 }
 0x35a   :  { %453 = vperm.xlu1 %897, %v906_v33  }
 0x35e   :  { %898 = vset.pattern.permute.xlu1 %v1116_v23 }
 0x35f   :  { %576 = vperm.xlu1 %898, %v908_v34  }
 0x3c4   :  { %v426_v35 = vpop.permute.xlu0 %425  ;;  %v431_v36 = vpop.permute.xlu1 %430 }
 0x3c5   :  { %v433_v20 = vsub.f32 %v406_v1, %v426_v35  ;;  %v434_v37 = vsub.f32 %v407_v0, %v431_v36  ;;  %v380_v1 = vld [vmem:[#allocation4] sm:$0xff] }
 0x3c6   :  { %v441_v47 = vmul.f32 %v906_v33, %v380_v1  ;;  %v564_v2 = vmul.f32 %v908_v34, %v380_v1 }
 0x3c7   :  { %v435_v38 = vmul.f32 1.442695, %v433_v20  ;;  %v437_v39 = vmul.f32 1.442695, %v434_v37 }
 0x3c9   :  { %909 = vpow2.f32 %v435_v38  ;;  %v549_v22 = vpop.permute.xlu1 %548 }
 0x3ca   :  { %911 = vpow2.f32 %v437_v39  ;;  %v556_v40 = vsub.f32 %v530_v4, %v549_v22 }
 0x3cc   :  { %v558_v41 = vmul.f32 1.442695, %v556_v40 }
 0x3cd   :  { %v554_v17 = vpop.permute.xlu1 %553 }
 0x3ce   :  { %913 = vpow2.f32 %v558_v41  ;;  %v557_v42 = vsub.f32 %v531_v5, %v554_v17 }
 0x3d0   :  { %v560_v43 = vmul.f32 1.442695, %v557_v42 }
 0x3d1   :  { %v590_v50 = vpop.permute.xlu1 %589 }
 0x3d2   :  { %915 = vpow2.f32 %v560_v43 }
 0x3d3   :  { %v910_v44 = vpop.eup %909  ;;  %917 = vpow2.f32 %v544_v48  ;;  %v459_v0 = vpop.permute.xlu0 %458 }
 0x3d4   :  { %v912_v45 = vpop.eup %911  ;;  %v439_v23 = vsel %vm374_vm8, %v910_v44, 0.0  ;;  %v462_v36 = vmul.f32 %v459_v0, %v383_v32 }
 0x3d5   :  { %v440_v46 = vsel %vm375_vm7, %v912_v45, 0.0  ;;  %v443_v49 = vsel %vm408_vm13, %v439_v23, 0.0  ;;  %v592_v57 = vpop.permute.xlu1 %591 }
 0x3d6   :  { %v446_v51 = vsel %vm408_vm13, %v440_v46, 0.0  ;;  %v463_v52 = vpack.c.bf16 %v440_v46, %v439_v23  ;;  %444 = vadd.xlane.f32.xlu1 %v443_v49 }
 0x3d7   :  { %447 = vadd.xlane.f32.xlu0 %v446_v51 }
 0x3d8   :  { %v914_v53 = vpop.eup %913  ;;  %833 = vmatmul.mubr.msk.bf16.vlgmr.msra.gmra.mrb[0].mxu0 %vm408_vm13, %v463_v52 }
 0x3d9   :  { %837 = vmatpush3.bf16.msra.mxu0 %v590_v50  ;;  %v562_v54 = vsel %vm374_vm8, %v914_v53, 0.0  ;;  %840 = vmatprep.mubr.msk.bf16.mxu0 %vm1114_vm4, %v1111_v11  ;;  %v454_v61 = vpop.permute.xlu1 %453 }
 0x3da   :  { %838 = vmatprep.subr.bf16.mxu0 %v1111_v11  ;;  %v566_v55 = vsel %vm408_vm13, %v562_v54, 0.0  ;;  %v461_v18 = vmul.f32 %v454_v61, %v382_v16 }
 0x3db   :  { %567 = vadd.xlane.f32.xlu1 %v566_v55 }
 0x3dc   :  { %v916_v56 = vpop.eup %915 }
 0x3dd   :  { %839 = vmatpush3.bf16.msra.mxu0 %v592_v57  ;;  %v563_v58 = vsel %vm375_vm7, %v916_v56, 0.0  ;;  %v918_v11 = vpop.eup %917 }
 0x3de   :  { %v569_v59 = vsel %vm408_vm13, %v563_v58, 0.0  ;;  %v586_v60 = vpack.c.bf16 %v563_v58, %v562_v54  ;;  %v577_v62 = vpop.permute.xlu1 %576  ;;  %v565_v10 = vmul.f32 %v918_v11, %v381_v3 }
 0x3df   :  { %570 = vadd.xlane.f32.xlu0 %v569_v59  ;;  %v584_v31 = vmul.f32 %v577_v62, %v382_v16 }
 0x3e0   :  { %841 = vmatmul.mubr.msk.bf16.vlgmr.msra.gmra.mrb[4].mxu0 %vm408_vm13, %v586_v60 }
 0x3f5   :  { %581 = vperm.xlu0 %899, %v918_v11  }
 0x463   :  { %v445_v63 = vpop.xlane.xlu1 %444 }
 0x464   :  { %v448_v4 = vpop.xlane.xlu0 %447  ;;  %v449_v6 = vadd.f32 %v445_v63, %v441_v47 }
 0x465   :  { %v450_v13 = vadd.f32 %v448_v4, %v442_v9 }
 0x468   :  { %v568_v5 = vpop.xlane.xlu1 %567 }
 0x469   :  { %v572_v7 = vadd.f32 %v568_v5, %v564_v2 }
 0x46b   :  { %v654_v8 = vsel %vm649_vm14, %v449_v6, %v572_v7 }
 0x46c   :  { %656 = vst.msk [vmem:[#allocation4] sm:$0xff] %vm171_vm3, %v654_v8  ;;  %v571_v12 = vpop.xlane.xlu0 %570 }
 0x46d   :  { %v573_v14 = vadd.f32 %v571_v12, %v565_v10 }
 0x46f   :  { %v655_v15 = vsel %vm649_vm14, %v450_v13, %v573_v14 }
 0x470   :  { %657 = vst.msk [vmem:[#allocation4 + $0x8] sm:$0xff] %vm171_vm3, %v655_v15 }
 0x474   :  { %v582_v33 = vpop.permute.xlu0 %581 }
 0x475   :  { %v585_v20 = vmul.f32 %v582_v33, %v383_v32 }
 0x4ab   :  { %v501_v19 = vpop.f32.mrb[0].mxu0 }
 0x4ac   :  { %v508_v21 = vadd.f32 %v501_v19, %v461_v18  ;;  %v834_v24 = vpop.f32.mrb[1].mxu0 }
 0x4ad   :  { %v504_v25 = vpop.f32.mrb[2].mxu0 }
 0x4ae   :  { %v835_v26 = vpop.f32.mrb[3].mxu0  ;;  %v509_v39 = vadd.f32 %v504_v25, %v462_v36 }
 0x4b3   :  { %v632_v27 = vpop.f32.mrb[4].mxu0 }
 0x4b4   :  { %641 = vrot.lane.b32.xlu1 %v632_v27, %s1118_s8  ;;  %v842_v28 = vpop.f32.mrb[5].mxu0 }
 0x4b5   :  { %v635_v29 = vpop.f32.mrb[6].mxu0 }
 0x4b6   :  { %v843_v30 = vpop.f32.mrb[7].mxu0 }
 0x4b8   :  { %643 = vrot.lane.b32.xlu1 %v635_v29, %s1118_s8 }
 0x526   :  { %v642_v34 = vpop.permute.xlu1 %641 }
 0x527   :  { %v647_v35 = vadd.f32 %v642_v34, %v584_v31 }
 0x529   :  { %v659_v37 = vsel %vm658_vm15, %v508_v21, %v647_v35 }
 0x52a   :  { %662 = vst.msk [vmem:[#allocation5] sm:$0xff] %vm178_vm0, %v659_v37  ;;  %v644_v38 = vpop.permute.xlu1 %643 }
 0x52b   :  { %v648_v22 = vadd.f32 %v644_v38, %v585_v20 }
 0x52d   :  { %v660_v40 = vsel %vm658_vm15, %v509_v39, %v648_v22 }
 0x52e   :  { %663 = vst.msk [vmem:[#allocation5 + $0x8] sm:$0xff] %vm178_vm0, %v660_v40 }
 0x52f PF:  { %v667_v41 = vld [vmem:[#allocation4] sm:$0xff]  ;;  %v668_v17 = vld [vmem:[#allocation4 + $0x8] sm:$0xff]  ;;  %v1119_v42 = vmov 1   ;;  %v1120_v43 = vmov 0   ;;  %vm697_vm0 = vcmask 31744   ;;  %s1121_s9 = smov 124  }
 0x530   :  { %920 = vset.pattern.permute.xlu1 %v1119_v42  ;;  %919 = vset.pattern.permute.xlu0 %v1120_v43  ;;  %v669_v44 = vmax.f32 %v667_v41, 1e-20  ;;  %v670_v45 = vmax.f32 %v668_v17, 1e-20  ;;  %v784_v54 = vld [vmem:[#allocation17] ss:$0 sm:$0xff] }
 0x531   :  { %v671_v49 = vld [vmem:[#allocation5] sm:$0xff]  ;;  %s1122_s11 = smov [#allocation19]  }
 0x532   :  { %922 = vrcp.f32 %v669_v44  ;;  %s752_s12 = sshll.u32 %s1122_s11, 4  ;;  %s753_s12 = int_to_ptr.vmem [resolvable:$true] %s752_s12 }
 0x533   :  { %924 = vrcp.f32 %v670_v45  ;;  %s1066_s13 = scalar_lea.vmem %s753_s12, 256  ;;  %p1071_p10 = scmp.lt.s32.totalorder %s753_s12, %s753_s12 }
 0x534   :  { %p1067_p9 = scmp.ne.s32.totalorder %s753_s12, %s1066_s13  ;;  %p1072_p11 = scmp.lt.s32.totalorder %s1066_s13, %s1066_s13 }
 0x535   :  { %v672_v55 = vld [vmem:[#allocation5 + $0x8] sm:$0xff] }
 0x536   :  { %p1073_p12 = por %p1072_p11, %p1071_p10 }
 0x538   :  { %p1074_p13 = pnand %p1073_p12, %p1067_p9 }
 0x53c   :  { %v923_v23 = vpop.eup %922 }
 0x53d   :  { %688 = vperm.xlu1 %920, %v923_v23   ;;  %677 = vperm.xlu0 %919, %v923_v23   ;;  %v925_v46 = vpop.eup %924 }
 0x541   :  { %692 = vperm.xlu1 %920, %v925_v46   ;;  %682 = vperm.xlu0 %919, %v925_v46  }
 0x545   :  { %921 = vset.pattern.permute.xlu0 %v1119_v42 }
 0x5bc   :  { %v689_v50 = vpop.permute.xlu1 %688  ;;  %v678_v51 = vpop.permute.xlu0 %677 }
 0x5bd   :  { %v695_v52 = vmul.f32 %v689_v50, %v671_v49  ;;  %v685_v53 = vmul.f32 %v678_v51, %v671_v49 }
 0x5bf   :  { %v698_v56 = vsel %vm697_vm0, %v685_v53, %v695_v52 }
 0x5c0   :  { %v693_v57 = vpop.permute.xlu1 %692  ;;  %v683_v58 = vpop.permute.xlu0 %682  ;;  %v707_v59 = vadd.f32 %v784_v54, %v698_v56 }
 0x5c1   :  { %v696_v60 = vmul.f32 %v693_v57, %v672_v55  ;;  %v686_v48 = vmul.f32 %v683_v58, %v672_v55 }
 0x5c2   :  { %711 = vrot.lane.b32.xlu0 %v707_v59, %s1121_s9 }
 0x5c3   :  { %v699_v11 = vsel %vm697_vm0, %v686_v48, %v696_v60 }
 0x5c4   :  { %v708_v61 = vadd.f32 %v784_v54, %v699_v11 }
 0x5c6   :  { %713 = vrot.lane.b32.xlu1 %v708_v61, %s1121_s9 }
 0x634   :  { %v712_v62 = vpop.permute.xlu0 %711 }
 0x635   :  { %v717_v63 = vadd.f32 %v712_v62, %v707_v59 }
 0x637   :  { %v719_v0 = vmul.f32 0.5, %v717_v63 }
 0x638   :  { %v714_v1 = vpop.permute.xlu1 %713 }
 0x639   :  { %v718_v47 = vadd.f32 %v714_v1, %v708_v61  ;;  %v721_v2 = vsel %vm697_vm0, %v719_v0, -inf }
 0x63a   :  { %722 = vmax.xlane.f32.xlu0 %v721_v2 }
 0x63b   :  { %v720_v3 = vmul.f32 0.5, %v718_v47 }
 0x63d   :  { %v724_v4 = vsel %vm697_vm0, %v720_v3, -inf }
 0x63e   :  { %725 = vmax.xlane.f32.xlu1 %v724_v4 }
 0x6c7   :  { %v723_v5 = vpop.xlane.xlu0 %722 }
 0x6c8   :  { %v727_v6 = vsub.f32 %v719_v0, %v723_v5 }
 0x6ca   :  { %v729_v7 = vmul.f32 1.442695, %v727_v6 }
 0x6cb   :  { %v726_v9 = vpop.xlane.xlu1 %725 }
 0x6cc   :  { %926 = vpow2.f32 %v729_v7  ;;  %v728_v8 = vsub.f32 %v720_v3, %v726_v9 }
 0x6ce   :  { %v731_v10 = vmul.f32 1.442695, %v728_v8 }
 0x6d0   :  { %928 = vpow2.f32 %v731_v10 }
 0x6d6   :  { %v927_v12 = vpop.eup %926 }
 0x6d7   :  { %v733_v13 = vsel %vm697_vm0, %v927_v12, 0.0 }
 0x6d8   :  { %734 = vadd.xlane.f32.xlu0 %v733_v13 }
 0x6da   :  { %v929_v14 = vpop.eup %928 }
 0x6db   :  { %v736_v15 = vsel %vm697_vm0, %v929_v14, 0.0 }
 0x6dc   :  { %737 = vadd.xlane.f32.xlu0 %v736_v15 }
 0x765   :  { %v735_v16 = vpop.xlane.xlu0 %734 }
 0x766   :  { %930 = vlog2.f32 %v735_v16 }
 0x769   :  { %v738_v18 = vpop.xlane.xlu0 %737 }
 0x76a   :  { %932 = vlog2.f32 %v738_v18 }
 0x770   :  { %v931_v19 = vpop.eup %930 }
 0x771   :  { %v740_v21 = vmul.f32 0.6931472, %v931_v19 }
 0x773   :  { %v743_v24 = vsub.f32 %v727_v6, %v740_v21 }
 0x774   :  { %v933_v25 = vpop.eup %932 }
 0x775   :  { %745 = vst.msk [vmem:[#allocation19] sm:$0xff] %vm697_vm0, %v743_v24  ;;  %v742_v26 = vmul.f32 0.6931472, %v933_v25 }
 0x777   :  { %v744_v27 = vsub.f32 %v728_v8, %v742_v26 }
 0x779   :  { %746 = vst.msk [vmem:[#allocation19 + $0x8] sm:$0xff] %vm697_vm0, %v744_v27 }
 0x77a   :  { %1077 = shalt.err (!%p1074_p13)
}
 0x77b   :  { %s1078_s18 = scalar_lea.hbm %s1398_s7, 256 }
 0x77c   :  { %p1079_p0 = scmp.ne.s32.totalorder %s1398_s7, %s1078_s18  ;;  %p1082_p1 = scmp.lt.u32.totalorder %s1078_s18, %s1398_s7 }
 0x77e   :  { %p1084_p2 = pnand %p1082_p1, %p1079_p0 }
 0x780   :  { %1087 = shalt.err (!%p1084_p2)
}
 0x781   :  { %s1123_s3 = smov 128   ;;  %s1124_s10 = smov 8  }
 0x782   :  { %758 = dma.vmem_to_hbm [thread:$0]  %s753_s12, 256, %s1398_s7, [#allocation10], %s1123_s3, %s1123_s3, %s1124_s10  }
 0x783   :  { %1096 = dma.done.wait [#allocation10], 256  }
 0x784   :  { %1097 = vsyncadd [#allocation10], 4294967040 }
 0x785   :  { %762 = vsyncpa [#allocation9], 1 }
 0x786   :  { %763 = vsyncpa [#allocation12], 1 }
 0x787   :  { %764 = vsyncpa [#allocation15], 1 }
 0x788   :  { %765 = vsyncpa [#allocation18], 1 }
 0x789   :  { %766 = vsyncpa [#allocation10], 1 }

// kernel: gat_forward.2
= control target key start
LH: loop header
LB: loop body
LE: loop exit
PB: predicated region body
PF: predicated region fallthrough
CT: control target
= control target key end

     0   :  { %13 = vsyncpa [#allocation9], 0  ;;  %s1903_s0 = inlined_call_operand.<no memory space> [shape: s32[1], index: 0, kind: input, shape index: {}]   ;;  %s1904_s1 = inlined_call_operand.hbm [shape: f32[64,16], index: 1, kind: input, shape index: {}, may-alias: {1,2}]   ;;  %s1905_s2 = inlined_call_operand.hbm [shape: f32[64,16], index: 2, kind: input, shape index: {}, may-alias: {1,2}]   ;;  %s1906_s3 = inlined_call_operand.hbm [shape: s8[32,64], index: 3, kind: input, shape index: {}]   ;;  %s1907_s4 = inlined_call_operand.hbm [shape: bf16[16,18], index: 4, kind: input, shape index: {}]   ;;  %s1908_s5 = inlined_call_operand.hbm [shape: bf16[16,2], index: 5, kind: input, shape index: {}]   ;;  %s1909_s6 = inlined_call_operand.hbm [shape: f32[1,16], index: 6, kind: input, shape index: {}]   ;;  %s1910_s7 = inlined_call_operand.hbm [shape: bf16[32,16], index: 7, kind: output, shape index: {}]  }
   0x1   :  { %14 = vsyncpa [#allocation12], 0 }
   0x2   :  { %15 = vsyncpa [#allocation15], 0 }
   0x3   :  { %16 = vsyncpa [#allocation18], 0 }
   0x4   :  { %17 = vsyncpa [#allocation10], 0  ;;  %s1458_s24 = smov [#allocation11]   ;;  %s1459_s26 = smov [#allocation14]  }
   0x5   :  { %s35_s25 = sshll.u32 %s1458_s24, 4  ;;  %s57_s27 = sshll.u32 %s1459_s26, 4  ;;  %s36_s25 = int_to_ptr.vmem [resolvable:$true] %s35_s25  ;;  %s1521_s27 = int_to_ptr.vmem [resolvable:$true] %s57_s27 }
   0x6   :  { %s1294_s30 = scalar_lea.hbm %s1905_s2, 512  ;;  %s1296_s12 = scalar_lea.hbm %s1905_s2, 1024 }
   0x7   :  { %p1295_p0 = scmp.ne.s32.totalorder %s1905_s2, %s1294_s30  ;;  %p1297_p1 = scmp.lt.u32.totalorder %s1296_s12, %s1294_s30 }
   0x8   :  { %p1298_p2 = scmp.lt.u32.totalorder %s1294_s30, %s1905_s2 }
   0xa   :  { %p1299_p3 = por %p1298_p2, %p1297_p1 }
   0xc   :  { %p1300_p4 = pnand %p1299_p3, %p1295_p0 }
   0xe   :  { %1303 = shalt.err (!%p1300_p4)
}
   0xf   :  { %s1304_s15 = scalar_lea.vmem %s36_s25, 512  ;;  %p1309_p6 = scmp.lt.s32.totalorder %s36_s25, %s36_s25 }
  0x10   :  { %p1305_p5 = scmp.ne.s32.totalorder %s36_s25, %s1304_s15  ;;  %p1310_p7 = scmp.lt.s32.totalorder %s1304_s15, %s1304_s15 }
  0x12   :  { %p1311_p8 = por %p1310_p7, %p1309_p6 }
  0x14   :  { %p1312_p9 = pnand %p1311_p8, %p1305_p5 }
  0x16   :  { %1315 = shalt.err (!%p1312_p9)
}
  0x17   :  { %s1460_s16 = smov 128   ;;  %s1461_s17 = smov 8  }
  0x18   :  { %41 = dma.hbm_to_vmem [thread:$0]  %s1905_s2, 512, %s36_s25, [#allocation12], %s1460_s16, %s1460_s16, %s1461_s17  }
  0x19   :  { %s1316_s22 = scalar_lea.hbm %s1907_s4, 128 }
  0x1a   :  { %p1317_p10 = scmp.ne.s32.totalorder %s1907_s4, %s1316_s22  ;;  %p1320_p11 = scmp.lt.u32.totalorder %s1316_s22, %s1907_s4 }
  0x1c   :  { %p1322_p12 = pnand %p1320_p11, %p1317_p10 }
  0x1e   :  { %1325 = shalt.err (!%p1322_p12)
}
  0x1f   :  { %s1326_s29 = scalar_lea.vmem %s1521_s27, 128  ;;  %p1331_p0 = scmp.lt.s32.totalorder %s1521_s27, %s1521_s27 }
  0x20   :  { %p1327_p13 = scmp.ne.s32.totalorder %s1521_s27, %s1326_s29  ;;  %p1332_p1 = scmp.lt.s32.totalorder %s1326_s29, %s1326_s29 }
  0x22   :  { %p1333_p2 = por %p1332_p1, %p1331_p0 }
  0x24   :  { %p1334_p3 = pnand %p1333_p2, %p1327_p13 }
  0x26   :  { %1337 = shalt.err (!%p1334_p3)
}
  0x27   :  { %s1462_s2 = smov 64   ;;  %s1463_s25 = smov 4  }
  0x28   :  { %63 = dma.hbm_to_vmem [thread:$0]  %s1907_s4, 128, %s1521_s27, [#allocation15], %s1462_s2, %s1462_s2, %s1463_s25  }
  0x29   :  { %s1464_s9 = smov [#allocation8]   ;;  %s1465_s11 = smov [#allocation13]  }
  0x2a   :  { %s23_s10 = sshll.u32 %s1464_s9, 4  ;;  %s48_s12 = sshll.u32 %s1465_s11, 4  ;;  %s24_s10 = int_to_ptr.vmem [resolvable:$true] %s23_s10  ;;  %s49_s12 = int_to_ptr.vmem [resolvable:$true] %s48_s12 }
  0x2b   :  { %s1338_s15 = scalar_lea.hbm %s1904_s1, 1024 }
  0x2c   :  { %p1339_p4 = scmp.ne.s32.totalorder %s1904_s1, %s1338_s15  ;;  %p1342_p5 = scmp.lt.u32.totalorder %s1338_s15, %s1904_s1 }
  0x2e   :  { %p1344_p6 = pnand %p1342_p5, %p1339_p4 }
  0x30   :  { %1347 = shalt.err (!%p1344_p6)
}
  0x31   :  { %s1348_s4 = scalar_lea.vmem %s24_s10, 1024  ;;  %p1353_p8 = scmp.lt.s32.totalorder %s24_s10, %s24_s10 }
  0x32   :  { %p1349_p7 = scmp.ne.s32.totalorder %s24_s10, %s1348_s4  ;;  %p1354_p9 = scmp.lt.s32.totalorder %s1348_s4, %s1348_s4 }
  0x34   :  { %p1355_p10 = por %p1354_p9, %p1353_p8 }
  0x36   :  { %p1356_p11 = pnand %p1355_p10, %p1349_p7 }
  0x38   :  { %1359 = shalt.err (!%p1356_p11)
}
  0x39   :  { %29 = dma.hbm_to_vmem [thread:$0]  %s1904_s1, 1024, %s24_s10, [#allocation9], %s1460_s16, %s1460_s16, %s1461_s17  }
  0x3a   :  { %s1360_s26 = scalar_lea.hbm %s1906_s3, 128 }
  0x3b   :  { %p1361_p12 = scmp.ne.s32.totalorder %s1906_s3, %s1360_s26  ;;  %p1364_p13 = scmp.lt.u32.totalorder %s1360_s26, %s1906_s3 }
  0x3d   :  { %p1366_p0 = pnand %p1364_p13, %p1361_p12 }
  0x3f   :  { %1369 = shalt.err (!%p1366_p0)
}
  0x40   :  { %s1370_s9 = scalar_lea.vmem %s49_s12, 128  ;;  %p1375_p2 = scmp.lt.s32.totalorder %s49_s12, %s49_s12 }
  0x41   :  { %p1371_p1 = scmp.ne.s32.totalorder %s49_s12, %s1370_s9  ;;  %p1376_p3 = scmp.lt.s32.totalorder %s1370_s9, %s1370_s9 }
  0x43   :  { %p1377_p4 = por %p1376_p3, %p1375_p2 }
  0x45   :  { %p1378_p5 = pnand %p1377_p4, %p1371_p1 }
  0x47   :  { %1381 = shalt.err (!%p1378_p5)
}
  0x48   :  { %51 = dma.hbm_to_vmem [thread:$0]  %s1906_s3, 128, %s49_s12, [#allocation12]  }
  0x49   :  { %s1466_s17 = smov [#allocation16]   ;;  %s1467_s11 = smov [#allocation17]  }
  0x4a   :  { %s69_s10 = sshll.u32 %s1466_s17, 4  ;;  %s82_s13 = sshll.u32 %s1467_s11, 4  ;;  %s70_s10 = int_to_ptr.vmem [resolvable:$true] %s69_s10  ;;  %s83_s13 = int_to_ptr.vmem [resolvable:$true] %s82_s13 }
  0x4b   :  { %s1382_s18 = scalar_lea.hbm %s1908_s5, 128 }
  0x4c   :  { %p1383_p6 = scmp.ne.s32.totalorder %s1908_s5, %s1382_s18  ;;  %p1386_p7 = scmp.lt.u32.totalorder %s1382_s18, %s1908_s5 }
  0x4e   :  { %p1388_p8 = pnand %p1386_p7, %p1383_p6 }
  0x50   :  { %1391 = shalt.err (!%p1388_p8)
}
  0x51   :  { %s1392_s3 = scalar_lea.vmem %s70_s10, 128  ;;  %p1397_p10 = scmp.lt.s32.totalorder %s70_s10, %s70_s10 }
  0x52   :  { %p1393_p9 = scmp.ne.s32.totalorder %s70_s10, %s1392_s3  ;;  %p1398_p11 = scmp.lt.s32.totalorder %s1392_s3, %s1392_s3 }
  0x54   :  { %p1399_p12 = por %p1398_p11, %p1397_p10 }
  0x56   :  { %p1400_p13 = pnand %p1399_p12, %p1393_p9 }
  0x58   :  { %1403 = shalt.err (!%p1400_p13)
}
  0x59   :  { %75 = dma.hbm_to_vmem [thread:$0]  %s1908_s5, 128, %s70_s10, [#allocation15], %s1462_s2, %s1462_s2, %s1463_s25  }
  0x5a   :  { %s1404_s24 = scalar_lea.hbm %s1909_s6, 16 }
  0x5b   :  { %p1405_p0 = scmp.ne.s32.totalorder %s1909_s6, %s1404_s24  ;;  %p1408_p1 = scmp.lt.u32.totalorder %s1404_s24, %s1909_s6 }
  0x5d   :  { %p1410_p2 = pnand %p1408_p1, %p1405_p0 }
  0x5f   :  { %1413 = shalt.err (!%p1410_p2)
}
  0x60   :  { %s1414_s8 = scalar_lea.vmem %s83_s13, 16  ;;  %s1418_s9 = scalar_lea.vmem %s83_s13, 32 }
  0x61   :  { %p1415_p3 = scmp.ne.s32.totalorder %s83_s13, %s1414_s8  ;;  %p1419_p4 = scmp.lt.s32.totalorder %s83_s13, %s83_s13 }
  0x62   :  { %p1420_p5 = scmp.lt.s32.totalorder %s1418_s9, %s1414_s8 }
  0x64   :  { %p1421_p6 = por %p1420_p5, %p1419_p4 }
  0x66   :  { %p1422_p7 = pnand %p1421_p6, %p1415_p3 }
  0x68   :  { %1425 = shalt.err (!%p1422_p7)
}
  0x69   :  { %85 = dma.hbm_to_vmem [thread:$0]  %s1909_s6, 16, %s83_s13, [#allocation18]  }
  0x6a   :  { %1448 = dma.done.wait [#allocation9], 1024  }
  0x6b   :  { %1449 = vsyncadd [#allocation9], 4294966272 }
  0x6c   :  { %1450 = dma.done.wait [#allocation12], 640  }
  0x6d   :  { %1451 = vsyncadd [#allocation12], 4294966656 }
  0x6e   :  { %1452 = dma.done.wait [#allocation15], 256  }
  0x6f   :  { %1453 = vsyncadd [#allocation15], 4294967040 }
  0x70   :  { %1454 = dma.done.wait [#allocation18], 16  }
  0x71   :  { %1455 = vsyncadd [#allocation18], 4294967280  ;;  %vm123_vm0 = vcmask 130048   ;;  %v1468_v0 = vmov 0.0   ;;  %v1218_v1 = vld [vmem:[#allocation16] sm:$0xff]   ;;  %v109_v2 = vld [vmem:[#allocation11] sm:$0xff] }
  0x72   :  { %192 = vst.msk [vmem:[#allocation5] sm:$0xff] %vm123_vm0, %v1468_v0  ;;  %193 = vst.msk [vmem:[#allocation5 + $0x8] sm:$0xff] %vm123_vm0, %v1468_v0  ;;  %v110_v3 = vld [vmem:[#allocation11 + $0x8] sm:$0xff]  ;;  %v111_v4 = vld [vmem:[#allocation11 + $0x10] sm:$0xff]  ;;  %1120 = vmatprep.subr.bf16.mxu0 %v1218_v1  ;;  %vm179_vm1 = vcmask 15360   ;;  %p1062_p8 = scmp.le.s32.totalorder %s1903_s0, 0 }
  0x73   :  { %194 = vst.msk [vmem:[#allocation5 + $0x10] sm:$0xff] %vm123_vm0, %v1468_v0  ;;  %195 = vst.msk [vmem:[#allocation5 + $0x18] sm:$0xff] %vm123_vm0, %v1468_v0  ;;  %v113_v5 = vpack.c.bf16 %v110_v3, %v109_v2  ;;  %v112_v6 = vld [vmem:[#allocation11 + $0x18] sm:$0xff]  ;;  %1121 = vmatpush3.bf16.msra.mxu0 %v1218_v1  ;;  %v1469_v8 = vmov -1e+30   ;;  %v1249_v13 = vld [vmem:[#allocation14] sm:$0xff] (!%p1062_p8)  }
  0x74   :  { %v114_v7 = vpack.c.bf16 %v112_v6, %v111_v4  ;;  %188 = vst.msk [vmem:[#allocation4] sm:$0xff] %vm179_vm1, %v1468_v0  ;;  %189 = vst.msk [vmem:[#allocation4 + $0x8] sm:$0xff] %vm179_vm1, %v1468_v0  ;;  %v202_v14 = vld [vmem:[#allocation8] sm:$0xff] (!%p1062_p8)  ;;  %v203_v15 = vld [vmem:[#allocation8 + $0x8] sm:$0xff] (!%p1062_p8)  ;;  %1126 = vmatprep.subr.bf16.mxu1 (!%p1062_p8), %v1249_v13  ;;  %v1470_v26 = vmov (!%p1062_p8), 0.0|0.0   ;;  %s1471_s0 = smov (!%p1062_p8), 112  }
  0x75   :  { %1122 = vmatprep.mubr.msk.bf16.mxu0 %vm123_vm0, %v113_v5  ;;  %190 = vst.msk [vmem:[#allocation4 + $0x10] sm:$0xff] %vm179_vm1, %v1468_v0  ;;  %191 = vst.msk [vmem:[#allocation4 + $0x18] sm:$0xff] %vm179_vm1, %v1468_v0  ;;  %v204_v16 = vld [vmem:[#allocation8 + $0x10] sm:$0xff] (!%p1062_p8)  ;;  %v210_v17 = vpack.c.bf16 (!%p1062_p8), %v203_v15, %v202_v14  ;;  %v205_v18 = vld [vmem:[#allocation8 + $0x18] sm:$0xff] (!%p1062_p8)  ;;  %1127 = vmatpush3.bf16.msra.mxu1 (!%p1062_p8), %v1249_v13  ;;  %vm1472_vm2 = vmmov (!%p1062_p8), 0   ;;  %v1473_v43 = vmov (!%p1062_p8), 0.0   ;;  %v304_v0 = vlaneseq (!%p1062_p8) }
  0x76   :  { %1123 = vmatmul.mubr.msk.bf16.vlgmr.msra.gmra.mrb[0].mxu0 %vm123_vm0, %v114_v7  ;;  %184 = vst.msk [vmem:[#allocation3] sm:$0xff] %vm179_vm1, %v1469_v8  ;;  %185 = vst.msk [vmem:[#allocation3 + $0x8] sm:$0xff] %vm179_vm1, %v1469_v8  ;;  %v206_v19 = vld [vmem:[#allocation8 + $0x20] sm:$0xff] (!%p1062_p8)  ;;  %v207_v20 = vld [vmem:[#allocation8 + $0x28] sm:$0xff] (!%p1062_p8)  ;;  %v211_v21 = vpack.c.bf16 (!%p1062_p8), %v205_v18, %v204_v16  ;;  %1179 = vmatprep.subr.bf16.mxu1 (!%p1062_p8), %v1470_v26  ;;  %v1474_v46 = vmov (!%p1062_p8), 0   ;;  %v1475_v49 = vmov (!%p1062_p8), 1  }
  0x77   :  { %186 = vst.msk [vmem:[#allocation3 + $0x10] sm:$0xff] %vm179_vm1, %v1469_v8  ;;  %187 = vst.msk [vmem:[#allocation3 + $0x18] sm:$0xff] %vm179_vm1, %v1469_v8  ;;  %v212_v22 = vpack.c.bf16 (!%p1062_p8), %v207_v20, %v206_v19  ;;  %1128 = vmatprep.mubr.msk.bf16.mxu1 (!%p1062_p8), %vm123_vm0, %v210_v17  ;;  %v208_v23 = vld [vmem:[#allocation8 + $0x30] sm:$0xff] (!%p1062_p8)  ;;  %v209_v24 = vld [vmem:[#allocation8 + $0x38] sm:$0xff] (!%p1062_p8)  ;;  %1240 = vset.pattern.permute.xlu1 (!%p1062_p8), %v1474_v46  ;;  %v305_v3 = vshrl.u32 (!%p1062_p8), %v304_v0, 7  ;;  %v307_v4 = vand.u32 (!%p1062_p8), 127, %v304_v0 }
  0x78   :  { %1129 = vmatmul.mubr.msk.bf16.vlgmr.msra.gmra.mrb[0].mxu1 (!%p1062_p8), %vm123_vm0, %v211_v21  ;;  %v213_v25 = vpack.c.bf16 (!%p1062_p8), %v209_v24, %v208_v23  ;;  %1239 = vset.pattern.permute.xlu0 (!%p1062_p8), %v1474_v46  ;;  %vm1665_vm3 = vmpackc.low (!%p1062_p8), %vm179_vm1, %vm179_vm1  ;;  %vm498_vm7 = vcmask (!%p1062_p8), 523264   ;;  %s1476_s17 = smov (!%p1062_p8), 120   ;;  %s1477_s10 = smov (!%p1062_p8), 8  }
  0x79   :  { %1132 = vmatprep.mubr.msk.bf16.mxu1 (!%p1062_p8), %vm123_vm0, %v212_v22  ;;  %vm308_vm4 = vcmp.eq.s32.totalorder (!%p1062_p8), %v305_v3, %v307_v4  ;;  %v476_v16 = vsub.s32 (!%p1062_p8), 0, %v305_v3  ;;  %v686_v17 = vsub.s32 (!%p1062_p8), 1, %v305_v3 }
  0x7a   :  { %v1068_v6 = vsel (!%p1062_p8), %vm308_vm4, 1.0, %v1473_v43  ;;  %vm909_vm4 = vcmask (!%p1062_p8), 7168  }
  0x80   :  { %1133 = vmatmul.mubr.msk.bf16.gmra.mrb[4].mxu1 (!%p1062_p8), %vm123_vm0, %v213_v25 }
  0x81   :  { %1152 = vmatprep.mubr.msk.f32.mxu1 (!%p1062_p8), %vm1472_vm2, %v1473_v43 }
 0x147   :  { %201 = sbr.rel (%p1062_p8) target bundleno = 1369 (0x559), region = 57 }
 0x149   :  { %v1124_v9 = vpop.f32.mrb[0].mxu0 }
 0x14a   :  { %182 = vst.msk [vmem:[#allocation2 + $0x10] sm:$0xff] %vm179_vm1, %v1124_v9  ;;  %v164_v10 = vpop.f32.mrb[1].mxu0 }
 0x14b   :  { %180 = vst.msk [vmem:[#allocation2] sm:$0xff] %vm179_vm1, %v164_v10  ;;  %v1125_v11 = vpop.f32.mrb[2].mxu0  ;;  %v1130_v27 = vpop.f32.mrb[0].mxu1 (!%p1062_p8)  ;;  %v425_v10 = vld [vmem:[#allocation13] sm:$0xff] (!%p1062_p8) }
 0x14c   :  { %183 = vst.msk [vmem:[#allocation2 + $0x18] sm:$0xff] %vm179_vm1, %v1125_v11  ;;  %v167_v12 = vpop.f32.mrb[3].mxu0  ;;  %v269_v28 = vpop.f32.mrb[1].mxu1 (!%p1062_p8)  ;;  %v427_v11 = vunpack.c.1.s8 (!%p1062_p8), %v425_v10  ;;  %v428_v13 = vunpack.c.2.s8 (!%p1062_p8), %v425_v10  ;;  %v429_v25 = vunpack.c.3.s8 (!%p1062_p8), %v425_v10 }
 0x14d   :  { %181 = vst.msk [vmem:[#allocation2 + $0x8] sm:$0xff] %vm179_vm1, %v167_v12  ;;  %v1131_v29 = vpop.f32.mrb[2].mxu1 (!%p1062_p8)  ;;  %v426_v12 = vunpack.c.0.s8 (!%p1062_p8), %v425_v10 }
 0x14e   :  { %v1224_v30 = vpack.i.bf16 %v1131_v29, %v1130_v27  ;;  %v1641_v31 = vpack.c.bf16 %v1131_v29, %v1130_v27  ;;  %v272_v32 = vpop.f32.mrb[3].mxu1  ;;  %v1681_v18 = vcvt.s32.f32 %v427_v11  ;;  %v1685_v20 = vcvt.s32.f32 %v428_v13  ;;  %v442_v13 = vld [vmem:[#allocation3] sm:$0xff] }
 0x14f   :  { %v1643_v33 = vpack.c.bf16 %v272_v32, %v269_v28  ;;  %v1219_v34 = vpack.i.bf16 %v272_v32, %v269_v28  ;;  %v1683_v19 = vcvt.s32.f32 %v426_v12  ;;  %v1743_v12 = vld [vmem:[#allocation3 + $0x8] sm:$0xff] }
 0x150   :  { %vm435_vm5 = vcmp.gt.f32.partialorder %v1681_v18, 0.0  ;;  %vm436_vm8 = vcmp.gt.f32.partialorder %v1685_v20, 0.0 }
 0x151   :  { %1220 = vrot.lane.b32.xlu0 %v1219_v34, %s1471_s0  ;;  %1155 = vmatprep.subr.bf16.mxu0 %v1643_v33  ;;  %v440_v47 = vld [vmem:[#allocation2 + $0x10] sm:$0xff]  ;;  %vm434_vm6 = vcmp.gt.f32.partialorder %v1683_v19, 0.0 }
 0x152   :  { %1156 = vmatpush3.bf16.msra.mxu0 %v1643_v33  ;;  %v438_v45 = vld [vmem:[#allocation2] sm:$0xff] }
 0x153   :  { %v1134_v35 = vpop.f32.mrb[4].mxu1  ;;  %1157 = vmatprep.subr.bf16.mxu0 %v1641_v31  ;;  %v441_v48 = vld [vmem:[#allocation2 + $0x18] sm:$0xff] }
 0x154   :  { %v285_v36 = vpop.f32.mrb[5].mxu1  ;;  %v439_v44 = vld [vmem:[#allocation2 + $0x8] sm:$0xff] }
 0x155   :  { %1225 = vrot.lane.b32.xlu0 %v1224_v30, %s1471_s0  ;;  %v1135_v37 = vpop.f32.mrb[6].mxu1 }
 0x156   :  { %v1234_v38 = vpack.i.bf16 %v1135_v37, %v1134_v35  ;;  %v1648_v39 = vpack.c.bf16 %v1135_v37, %v1134_v35  ;;  %v288_v40 = vpop.f32.mrb[7].mxu1  ;;  %1158 = vmatpush3.bf16.msra.mxu0 %v1641_v31  ;;  %v1690_v37 = vcvt.s32.f32 %v429_v25 }
 0x157   :  { %v1651_v41 = vpack.c.bf16 %v288_v40, %v285_v36  ;;  %v1229_v42 = vpack.i.bf16 %v288_v40, %v285_v36 }
 0x158   :  { %vm437_vm15 = vcmp.gt.f32.partialorder %v1690_v37, 0.0 }
 0x159   :  { %1159 = vmatprep.subr.bf16.mxu0 %v1651_v41  ;;  %1230 = vrot.lane.b32.xlu1 %v1229_v42, %s1471_s0 }
 0x15a   :  { %1160 = vmatpush3.bf16.msra.mxu0 %v1651_v41  ;;  %456 = vperm.xlu0 %1239, %v438_v45  }
 0x15b   :  { %1161 = vmatprep.subr.bf16.mxu0 %v1648_v39 }
 0x15d   :  { %1235 = vrot.lane.b32.xlu1 %v1234_v38, %s1471_s0 }
 0x15e   :  { %1162 = vmatpush3.bf16.msra.mxu0 %v1648_v39  ;;  %471 = vperm.xlu0 %1239, %v441_v48  }
 0x161   :  { %461 = vperm.xlu1 %1240, %v439_v44  }
 0x162   :  { %1242 = vset.pattern.permute.xlu0 %v1475_v49 }
 0x163   :  { %673 = vperm.xlu0 %1242, %v439_v44  }
 0x165   :  { %466 = vperm.xlu1 %1240, %v440_v47  }
 0x167   :  { %1244 = vset.pattern.permute.xlu0 %v1474_v46 }
 0x169   :  { %1241 = vset.pattern.permute.xlu1 %v1475_v49 }
 0x16a   :  { %669 = vperm.xlu1 %1241, %v438_v45  }
 0x16e   :  { %677 = vperm.xlu1 %1241, %v440_v47  }
 0x172   :  { %681 = vperm.xlu1 %1241, %v441_v48  }
 0x176   :  { %1243 = vset.pattern.permute.xlu1 %v1474_v46 }
 0x1c3   :  { %v1221_v50 = vpop.permute.xlu0 %1220 }
 0x1c4   :  { %v1223_v51 = vunpack.i.h.bf16 %v1221_v50  ;;  %v1222_v52 = vunpack.i.l.bf16 %v1221_v50 }
 0x1c6   :  { %v1180_v54 = vpack.c.bf16 %v1223_v51, %v1222_v52 }
 0x1c7   :  { %v1226_v55 = vpop.permute.xlu0 %1225 }
 0x1c8   :  { %1182 = vmatpush3.bf16.xpose.msk.msra.mxu1 %vm1665_vm3, %v1180_v54  ;;  %v1228_v56 = vunpack.i.h.bf16 %v1226_v55  ;;  %v1227_v57 = vunpack.i.l.bf16 %v1226_v55 }
 0x1c9   :  { %1183 = vmatprep.subr.bf16.mxu1 %v1470_v26 }
 0x1ca   :  { %v1184_v58 = vpack.c.bf16 %v1228_v56, %v1227_v57 }
 0x1cb   :  { %v1231_v59 = vpop.permute.xlu1 %1230 }
 0x1cc   :  { %v1233_v60 = vunpack.i.h.bf16 %v1231_v59  ;;  %v1232_v61 = vunpack.i.l.bf16 %v1231_v59 }
 0x1ce   :  { %v1188_v62 = vpack.c.bf16 %v1233_v60, %v1232_v61 }
 0x1cf   :  { %v1236_v63 = vpop.permute.xlu1 %1235 }
 0x1d0   :  { %1186 = vmatpush3.bf16.xpose.msk.msra.mxu1 %vm1665_vm3, %v1184_v58  ;;  %v1238_v1 = vunpack.i.h.bf16 %v1236_v63  ;;  %v1237_v2 = vunpack.i.l.bf16 %v1236_v63 }
 0x1d1   :  { %1187 = vmatprep.subr.bf16.mxu1 %v1470_v26 }
 0x1d2   :  { %v1192_v5 = vpack.c.bf16 %v1238_v1, %v1237_v2 }
 0x1d8   :  { %1190 = vmatpush3.bf16.xpose.msk.msra.mxu1 %vm1665_vm3, %v1188_v62 }
 0x1d9   :  { %1191 = vmatprep.subr.bf16.mxu1 %v1470_v26  ;;  %v457_v8 = vpop.permute.xlu0 %456 }
 0x1dd   :  { %v472_v14 = vpop.permute.xlu0 %471 }
 0x1e0   :  { %1194 = vmatpush3.bf16.xpose.msk.msra.mxu1 %vm1665_vm3, %v1192_v5  ;;  %v462_v7 = vpop.permute.xlu1 %461 }
 0x1e2   :  { %v674_v26 = vpop.permute.xlu0 %673 }
 0x1e4   :  { %v467_v9 = vpop.permute.xlu1 %466 }
 0x1e7   :  { %1153 = vmatmul.mubr.msk.f32.vlgmr.msra.gmra.mrb[8].mxu1 %vm179_vm1, %v1068_v6 }
 0x1e9   :  { %v670_v15 = vpop.permute.xlu1 %669 }
 0x1ed   :  { %v678_v27 = vpop.permute.xlu1 %677 }
 0x1f1   :  { %v682_v50 = vpop.permute.xlu1 %681 }
 0x2ba   :  { %v421_v21 = vpop.f32.mrb[8].mxu1 }
 0x2bb   :  { %v477_v22 = vrot.slane %v421_v21, %v476_v16  ;;  %v687_v23 = vrot.slane %v421_v21, %v686_v17  ;;  %v1154_v24 = vpop.f32.mrb[9].mxu1  ;;  %v1746_v21 = vld [vmem:[#allocation3 + $0x10] sm:$0xff] }
 0x2bd   :  { %v479_v28 = vadd.f32 %v477_v22, %v462_v7  ;;  %v478_v29 = vadd.f32 %v477_v22, %v457_v8  ;;  %v688_v30 = vadd.f32 %v687_v23, %v670_v15  ;;  %v480_v32 = vadd.f32 %v477_v22, %v467_v9 }
 0x2be   :  { %v690_v34 = vadd.f32 %v687_v23, %v678_v27  ;;  %v481_v35 = vadd.f32 %v477_v22, %v472_v14  ;;  %v689_v36 = vadd.f32 %v687_v23, %v674_v26  ;;  %v691_v60 = vadd.f32 %v687_v23, %v682_v50 }
 0x2bf   :  { %vm483_vm9 = vcmp.gt.f32.partialorder %v479_v28, 0.0  ;;  %vm482_vm10 = vcmp.gt.f32.partialorder %v478_v29, 0.0  ;;  %v487_v38 = vmul.f32 0.2, %v479_v28  ;;  %v486_v40 = vmul.f32 0.2, %v478_v29 }
 0x2c0   :  { %vm692_vm11 = vcmp.gt.f32.partialorder %v688_v30, 0.0  ;;  %vm484_vm12 = vcmp.gt.f32.partialorder %v480_v32, 0.0  ;;  %v696_v42 = vmul.f32 0.2, %v688_v30  ;;  %v488_v43 = vmul.f32 0.2, %v480_v32 }
 0x2c1   :  { %vm694_vm13 = vcmp.gt.f32.partialorder %v690_v34, 0.0  ;;  %vm485_vm14 = vcmp.gt.f32.partialorder %v481_v35, 0.0  ;;  %v491_v44 = vsel %vm483_vm9, %v479_v28, %v487_v38  ;;  %v490_v45 = vsel %vm482_vm10, %v478_v29, %v486_v40  ;;  %v1750_v28 = vld [vmem:[#allocation3 + $0x18] sm:$0xff] }
 0x2c2   :  { %v698_v47 = vmul.f32 0.2, %v690_v34  ;;  %v489_v48 = vmul.f32 0.2, %v481_v35  ;;  %v1694_v51 = vsel %vm435_vm5, %v491_v44, -1e+30  ;;  %v700_v53 = vsel %vm692_vm11, %v688_v30, %v696_v42 }
 0x2c3   :  { %v1698_v52 = vsel %vm434_vm6, %v490_v45, -1e+30  ;;  %v492_v54 = vsel %vm484_vm12, %v480_v32, %v488_v43  ;;  %v502_v55 = vsel %vm498_vm7, %v1694_v51, -inf  ;;  %v1706_v57 = vsel %vm434_vm6, %v700_v53, -1e+30 }
 0x2c4   :  { %v499_v56 = vsel %vm498_vm7, %v1698_v52, -inf  ;;  %503 = vmax.xlane.f32.xlu1 %v502_v55  ;;  %v1710_v58 = vsel %vm436_vm8, %v492_v54, -1e+30  ;;  %v697_v59 = vmul.f32 0.2, %v689_v36  ;;  %v702_v61 = vsel %vm694_vm13, %v690_v34, %v698_v47 }
 0x2c5   :  { %500 = vmax.xlane.f32.xlu0 %v499_v56  ;;  %v493_v62 = vsel %vm485_vm14, %v481_v35, %v489_v48  ;;  %vm693_vm2 = vcmp.gt.f32.partialorder %v689_v36, 0.0  ;;  %v708_v63 = vsel %vm498_vm7, %v1706_v57, -inf  ;;  %v505_v0 = vsel %vm498_vm7, %v1710_v58, -inf }
 0x2c6   :  { %v1721_v1 = vsel %vm436_vm8, %v702_v61, -1e+30  ;;  %v1725_v2 = vsel %vm437_vm15, %v493_v62, -1e+30  ;;  %v699_v3 = vmul.f32 0.2, %v691_v60  ;;  %v701_v4 = vsel %vm693_vm2, %v689_v36, %v697_v59 }
 0x2c7   :  { %vm695_vm3 = vcmp.gt.f32.partialorder %v691_v60, 0.0  ;;  %v714_v5 = vsel %vm498_vm7, %v1721_v1, -inf  ;;  %v508_v6 = vsel %vm498_vm7, %v1725_v2, -inf  ;;  %v1733_v7 = vsel %vm435_vm5, %v701_v4, -1e+30 }
 0x2c8   :  { %709 = vmax.xlane.f32.xlu1 %v708_v63  ;;  %v703_v8 = vsel %vm695_vm3, %v691_v60, %v699_v3  ;;  %v711_v9 = vsel %vm498_vm7, %v1733_v7, -inf }
 0x2c9   :  { %506 = vmax.xlane.f32.xlu0 %v505_v0  ;;  %v1739_v10 = vsel %vm437_vm15, %v703_v8, -1e+30 }
 0x2ca   :  { %v717_v11 = vsel %vm498_vm7, %v1739_v10, -inf }
 0x2cc   :  { %715 = vmax.xlane.f32.xlu1 %v714_v5 }
 0x2cd   :  { %509 = vmax.xlane.f32.xlu0 %v508_v6 }
 0x2d1   :  { %712 = vmax.xlane.f32.xlu0 %v711_v9 }
 0x2d5   :  { %718 = vmax.xlane.f32.xlu0 %v717_v11 }
 0x351   :  { %v504_v14 = vpop.xlane.xlu1 %503 }
 0x352   :  { %v501_v15 = vpop.xlane.xlu0 %500  ;;  %v512_v16 = vmax.f32 %v1743_v12, %v504_v14 }
 0x353   :  { %v511_v17 = vmax.f32 %v442_v13, %v501_v15 }
 0x354   :  { %v516_v22 = vsub.f32 %v1743_v12, %v512_v16  ;;  %534 = vperm.xlu0 %1244, %v512_v16  }
 0x355   :  { %529 = vperm.xlu1 %1243, %v511_v17   ;;  %v710_v23 = vpop.xlane.xlu1 %709  ;;  %v515_v53 = vsub.f32 %v442_v13, %v511_v17 }
 0x356   :  { %v507_v24 = vpop.xlane.xlu0 %506  ;;  %v521_v25 = vmul.f32 1.442695, %v516_v22  ;;  %v720_v26 = vmax.f32 %v442_v13, %v710_v23 }
 0x357   :  { %v513_v27 = vmax.f32 %v1746_v21, %v507_v24  ;;  %v519_v54 = vmul.f32 1.442695, %v515_v53 }
 0x358   :  { %1250 = vpow2.f32 %v521_v25  ;;  %v910_v29 = vsel %vm909_vm4, %v511_v17, %v720_v26  ;;  %826 = vrot.lane.b32.xlu0 %v1651_v41, %s1476_s17  ;;  %v724_v61 = vsub.f32 %v442_v13, %v720_v26 }
 0x359   :  { %539 = vperm.xlu1 %1243, %v513_v27   ;;  %914 = vst.msk [vmem:[#allocation3] sm:$0xff] %vm179_vm1, %v910_v29  ;;  %v716_v30 = vpop.xlane.xlu1 %715  ;;  %v517_v55 = vsub.f32 %v1746_v21, %v513_v27  ;;  %1252 = vpow2.f32 %v519_v54 }
 0x35a   :  { %v510_v32 = vpop.xlane.xlu0 %509  ;;  %v1757_v34 = vmax.f32 %v1746_v21, %v716_v30  ;;  %v728_v62 = vmul.f32 1.442695, %v724_v61 }
 0x35b   :  { %v514_v35 = vmax.f32 %v1750_v28, %v510_v32  ;;  %v523_v56 = vmul.f32 1.442695, %v517_v55 }
 0x35c   :  { %v726_v36 = vsub.f32 %v1746_v21, %v1757_v34  ;;  %v912_v38 = vsel %vm909_vm4, %v513_v27, %v1757_v34 }
 0x35d   :  { %544 = vperm.xlu1 %1243, %v514_v35   ;;  %916 = vst.msk [vmem:[#allocation3 + $0x10] sm:$0xff] %vm179_vm1, %v912_v38  ;;  %v518_v59 = vsub.f32 %v1750_v28, %v514_v35  ;;  %1254 = vpow2.f32 %v523_v56 }
 0x35e   :  { %v713_v40 = vpop.xlane.xlu0 %712 }
 0x35f   :  { %v1766_v41 = vmax.f32 %v1743_v12, %v713_v40  ;;  %v525_v60 = vmul.f32 1.442695, %v518_v59 }
 0x361   :  { %v725_v42 = vsub.f32 %v1743_v12, %v1766_v41  ;;  %v911_v43 = vsel %vm909_vm4, %v512_v16, %v1766_v41  ;;  %1245 = vset.pattern.permute.xlu1 %v1475_v49  ;;  %1256 = vpow2.f32 %v525_v60 }
 0x362   :  { %915 = vst.msk [vmem:[#allocation3 + $0x8] sm:$0xff] %vm179_vm1, %v911_v43  ;;  %738 = vperm.xlu1 %1245, %v720_v26   ;;  %v719_v44 = vpop.xlane.xlu0 %718  ;;  %v1774_v45 = vpop.eup %1250  ;;  %1258 = vpow2.f32 %v728_v62 }
 0x363   :  { %v1777_v47 = vmax.f32 %v1750_v28, %v719_v44  ;;  %590 = vperm.xlu0 %1244, %v1774_v45   ;;  %v1798_v63 = vpop.eup %1252 }
 0x365   :  { %v727_v48 = vsub.f32 %v1750_v28, %v1777_v47  ;;  %v913_v50 = vsel %vm909_vm4, %v514_v35, %v1777_v47 }
 0x366   :  { %917 = vst.msk [vmem:[#allocation3 + $0x18] sm:$0xff] %vm179_vm1, %v913_v50  ;;  %743 = vperm.xlu1 %1245, %v1766_v41  }
 0x367   :  { %1248 = vset.pattern.permute.xlu0 %v1475_v49 }
 0x36a   :  { %748 = vperm.xlu1 %1245, %v1757_v34   ;;  %v730_v34 = vmul.f32 1.442695, %v725_v42  ;;  %v447_v42 = vld [vmem:[#allocation4 + $0x8] sm:$0xff] }
 0x36e   :  { %753 = vperm.xlu1 %1245, %v1777_v47  }
 0x372   :  { %822 = vrot.lane.b32.xlu1 %v1643_v33, %s1476_s17  ;;  %v1801_v33 = vpop.eup %1254 }
 0x373   :  { %1246 = vset.pattern.permute.xlu1 %v1474_v46  ;;  %v1804_v46 = vpop.eup %1256 }
 0x376   :  { %824 = vrot.lane.b32.xlu1 %v1641_v31, %s1476_s17  ;;  %v1807_v31 = vpop.eup %1258 }
 0x37a   :  { %828 = vrot.lane.b32.xlu1 %v1648_v39, %s1476_s17 }
 0x37e   :  { %585 = vperm.xlu1 %1246, %v1798_v63  }
 0x382   :  { %595 = vperm.xlu1 %1246, %v1801_v33  }
 0x386   :  { %600 = vperm.xlu1 %1246, %v1804_v46  }
 0x38a   :  { %1247 = vset.pattern.permute.xlu1 %v1475_v49 }
 0x38b   :  { %794 = vperm.xlu1 %1247, %v1807_v31  }
 0x3d3   :  { %v535_v0 = vpop.permute.xlu0 %534 }
 0x3d4   :  { %v530_v39 = vpop.permute.xlu1 %529  ;;  %v548_v4 = vsub.f32 %v1694_v51, %v535_v0 }
 0x3d5   :  { %v547_v3 = vsub.f32 %v1698_v52, %v530_v39 }
 0x3d6   :  { %v553_v6 = vmul.f32 1.442695, %v548_v4 }
 0x3d7   :  { %v551_v5 = vmul.f32 1.442695, %v547_v3  ;;  %v827_v0 = vpop.permute.xlu0 %826  ;;  %v732_v3 = vmul.f32 1.442695, %v726_v36 }
 0x3d8   :  { %v540_v8 = vpop.permute.xlu1 %539 }
 0x3d9   :  { %1260 = vpow2.f32 %v551_v5  ;;  %v549_v9 = vsub.f32 %v1710_v58, %v540_v8  ;;  %v734_v8 = vmul.f32 1.442695, %v727_v48 }
 0x3da   :  { %1262 = vpow2.f32 %v553_v6 }
 0x3db   :  { %v555_v11 = vmul.f32 1.442695, %v549_v9 }
 0x3dc   :  { %v545_v13 = vpop.permute.xlu1 %544 }
 0x3dd   :  { %1264 = vpow2.f32 %v555_v11  ;;  %v550_v49 = vsub.f32 %v1725_v2, %v545_v13 }
 0x3df   :  { %v557_v14 = vmul.f32 1.442695, %v550_v49 }
 0x3e1   :  { %1266 = vpow2.f32 %v557_v14  ;;  %v739_v15 = vpop.permute.xlu1 %738 }
 0x3e2   :  { %v756_v16 = vsub.f32 %v1706_v57, %v739_v15  ;;  %v1856_v48 = vpop.permute.xlu0 %590 }
 0x3e3   :  { %v1261_v52 = vpop.eup %1260 }
 0x3e4   :  { %v1263_v17 = vpop.eup %1262  ;;  %v760_v51 = vmul.f32 1.442695, %v756_v16  ;;  %v559_v22 = vsel %vm434_vm6, %v1261_v52, 0.0  ;;  %v446_v52 = vld [vmem:[#allocation4] sm:$0xff] }
 0x3e5   :  { %v744_v23 = vpop.permute.xlu1 %743  ;;  %v560_v58 = vsel %vm435_vm5, %v1263_v17, 0.0  ;;  %v567_v24 = vsel %vm498_vm7, %v559_v22, 0.0  ;;  %v563_v12 = vmul.f32 %v1798_v63, %v446_v52  ;;  %v772_v41 = vmul.f32 %v1807_v31, %v446_v52 }
 0x3e6   :  { %1268 = vpow2.f32 %v760_v51  ;;  %v757_v2 = vsub.f32 %v1733_v7, %v744_v23  ;;  %v570_v25 = vsel %vm498_vm7, %v560_v58, 0.0  ;;  %568 = vadd.xlane.f32.xlu0 %v567_v24  ;;  %v607_v26 = vpack.c.bf16 %v560_v58, %v559_v22 }
 0x3e7   :  { %v1265_v57 = vpop.eup %1264  ;;  %571 = vadd.xlane.f32.xlu1 %v570_v25  ;;  %v564_v58 = vmul.f32 %v1774_v45, %v447_v42  ;;  %v448_v25 = vld [vmem:[#allocation4 + $0x10] sm:$0xff] }
 0x3e8   :  { %v762_v27 = vmul.f32 1.442695, %v757_v2  ;;  %1163 = vmatprep.mubr.msk.bf16.mxu0 %vm498_vm7, %v607_v26  ;;  %v561_v29 = vsel %vm436_vm8, %v1265_v57, 0.0  ;;  %v565_v63 = vmul.f32 %v1801_v33, %v448_v25 }
 0x3e9   :  { %v749_v30 = vpop.permute.xlu1 %748  ;;  %v573_v32 = vsel %vm498_vm7, %v561_v29, 0.0 }
 0x3ea   :  { %1270 = vpow2.f32 %v762_v27  ;;  %v758_v35 = vsub.f32 %v1721_v1, %v749_v30  ;;  %574 = vadd.xlane.f32.xlu0 %v573_v32  ;;  %v449_v30 = vld [vmem:[#allocation4 + $0x18] sm:$0xff] }
 0x3eb   :  { %v1267_v7 = vpop.eup %1266 }
 0x3ec   :  { %v764_v38 = vmul.f32 1.442695, %v758_v35  ;;  %v562_v40 = vsel %vm437_vm15, %v1267_v7, 0.0  ;;  %v566_v7 = vmul.f32 %v1804_v46, %v449_v30 }
 0x3ed   :  { %v754_v43 = vpop.permute.xlu1 %753  ;;  %v576_v44 = vsel %vm498_vm7, %v562_v40, 0.0  ;;  %v608_v50 = vpack.c.bf16 %v562_v40, %v561_v29 }
 0x3ee   :  { %1272 = vpow2.f32 %v764_v38  ;;  %v759_v53 = vsub.f32 %v1739_v10, %v754_v43  ;;  %577 = vadd.xlane.f32.xlu0 %v576_v44 }
 0x3ef   :  { %1164 = vmatmul.mubr.msk.bf16.vlgmr.msra.gmra.mrb[0].mxu0 %vm498_vm7, %v608_v50 }
 0x3f0   :  { %v1269_v54 = vpop.eup %1268  ;;  %v766_v55 = vmul.f32 1.442695, %v759_v53  ;;  %v452_v53 = vld [vmem:[#allocation5 + $0x10] sm:$0xff] }
 0x3f1   :  { %v823_v56 = vpop.permute.xlu1 %822  ;;  %v768_v1 = vsel %vm434_vm6, %v1269_v54, 0.0  ;;  %v450_v54 = vld [vmem:[#allocation5] sm:$0xff] }
 0x3f2   :  { %1274 = vpow2.f32 %v766_v55  ;;  %1167 = vmatprep.subr.bf16.mxu0 %v823_v56  ;;  %v776_v59 = vsel %vm498_vm7, %v768_v1, 0.0  ;;  %v453_v55 = vld [vmem:[#allocation5 + $0x18] sm:$0xff] }
 0x3f3   :  { %777 = vadd.xlane.f32.xlu0 %v776_v59  ;;  %1168 = vmatpush3.bf16.msra.mxu0 %v823_v56  ;;  %1276 = vpow2.f32 %v732_v3 }
 0x3f4   :  { %v1271_v60 = vpop.eup %1270  ;;  %1278 = vpow2.f32 %v734_v8 }
 0x3f5   :  { %v825_v61 = vpop.permute.xlu1 %824  ;;  %v769_v10 = vsel %vm435_vm5, %v1271_v60, 0.0  ;;  %1280 = vpow2.f32 %v730_v34 }
 0x3f6   :  { %1169 = vmatprep.subr.bf16.mxu0 %v825_v61  ;;  %v779_v62 = vsel %vm498_vm7, %v769_v10, 0.0  ;;  %v816_v39 = vpack.c.bf16 %v769_v10, %v768_v1 }
 0x3f7   :  { %780 = vadd.xlane.f32.xlu1 %v779_v62  ;;  %1170 = vmatpush3.bf16.msra.mxu0 %v825_v61 }
 0x3f8   :  { %v1273_v19 = vpop.eup %1272  ;;  %1171 = vmatprep.subr.bf16.mxu0 %v827_v0  ;;  %1175 = vmatprep.mubr.msk.bf16.mxu0 %vm498_vm7, %v816_v39 }
 0x3f9   :  { %v770_v4 = vsel %vm436_vm8, %v1273_v19, 0.0  ;;  %v829_v5 = vpop.permute.xlu1 %828 }
 0x3fa   :  { %v782_v18 = vsel %vm498_vm7, %v770_v4, 0.0 }
 0x3fb   :  { %783 = vadd.xlane.f32.xlu0 %v782_v18  ;;  %1172 = vmatpush3.bf16.msra.mxu0 %v827_v0 }
 0x3fc   :  { %v1275_v6 = vpop.eup %1274  ;;  %1173 = vmatprep.subr.bf16.mxu0 %v829_v5 }
 0x3fd   :  { %v771_v9 = vsel %vm437_vm15, %v1275_v6, 0.0  ;;  %v1277_v36 = vpop.eup %1276  ;;  %v586_v37 = vpop.permute.xlu1 %585 }
 0x3fe   :  { %v785_v21 = vsel %vm498_vm7, %v771_v9, 0.0  ;;  %v817_v20 = vpack.c.bf16 %v771_v9, %v770_v4  ;;  %v1279_v28 = vpop.eup %1278  ;;  %v774_v29 = vmul.f32 %v1277_v36, %v448_v25  ;;  %v603_v1 = vmul.f32 %v586_v37, %v450_v54 }
 0x3ff   :  { %786 = vadd.xlane.f32.xlu0 %v785_v21  ;;  %1174 = vmatpush3.bf16.msra.mxu0 %v829_v5  ;;  %v1281_v47 = vpop.eup %1280  ;;  %v775_v40 = vmul.f32 %v1279_v28, %v449_v30 }
 0x400   :  { %v773_v2 = vmul.f32 %v1281_v47, %v447_v42 }
 0x401   :  { %v596_v11 = vpop.permute.xlu1 %595 }
 0x402   :  { %1176 = vmatmul.mubr.msk.bf16.vlgmr.msra.gmra.mrb[4].mxu0 %vm498_vm7, %v817_v20  ;;  %v605_v56 = vmul.f32 %v596_v11, %v452_v53 }
 0x405   :  { %v601_v49 = vpop.permute.xlu1 %600 }
 0x406   :  { %v606_v60 = vmul.f32 %v601_v49, %v453_v55 }
 0x408   :  { %804 = vperm.xlu1 %1247, %v1277_v36   ;;  %v451_v36 = vld [vmem:[#allocation5 + $0x8] sm:$0xff] }
 0x409   :  { %v604_v11 = vmul.f32 %v1856_v48, %v451_v36 }
 0x40a   :  { %v795_v16 = vpop.permute.xlu1 %794 }
 0x40b   :  { %v812_v20 = vmul.f32 %v795_v16, %v450_v54 }
 0x40c   :  { %809 = vperm.xlu1 %1247, %v1279_v28  }
 0x415   :  { %799 = vperm.xlu0 %1248, %v1281_v47  }
 0x473   :  { %v569_v13 = vpop.xlane.xlu0 %568 }
 0x474   :  { %v572_v17 = vpop.xlane.xlu1 %571  ;;  %v579_v22 = vadd.f32 %v569_v13, %v563_v12 }
 0x475   :  { %v580_v57 = vadd.f32 %v572_v17, %v564_v58 }
 0x477   :  { %v575_v14 = vpop.xlane.xlu0 %574 }
 0x478   :  { %v581_v35 = vadd.f32 %v575_v14, %v565_v63 }
 0x47b   :  { %v578_v15 = vpop.xlane.xlu0 %577 }
 0x47c   :  { %v582_v44 = vadd.f32 %v578_v15, %v566_v7 }
 0x480   :  { %v778_v51 = vpop.xlane.xlu0 %777 }
 0x481   :  { %v788_v23 = vadd.f32 %v778_v51, %v772_v41 }
 0x483   :  { %v918_v24 = vsel %vm909_vm4, %v579_v22, %v788_v23 }
 0x484   :  { %922 = vst.msk [vmem:[#allocation4] sm:$0xff] %vm179_vm1, %v918_v24  ;;  %v781_v26 = vpop.xlane.xlu1 %780 }
 0x485   :  { %v789_v27 = vadd.f32 %v781_v26, %v773_v2 }
 0x487   :  { %v919_v31 = vsel %vm909_vm4, %v580_v57, %v789_v27 }
 0x488   :  { %923 = vst.msk [vmem:[#allocation4 + $0x8] sm:$0xff] %vm179_vm1, %v919_v31  ;;  %v784_v32 = vpop.xlane.xlu0 %783  ;;  %v805_v5 = vpop.permute.xlu1 %804 }
 0x489   :  { %v790_v45 = vadd.f32 %v784_v32, %v774_v29  ;;  %v814_v8 = vmul.f32 %v805_v5, %v452_v53 }
 0x48b   :  { %v920_v38 = vsel %vm909_vm4, %v581_v35, %v790_v45 }
 0x48c   :  { %924 = vst.msk [vmem:[#allocation4 + $0x10] sm:$0xff] %vm179_vm1, %v920_v38  ;;  %v787_v43 = vpop.xlane.xlu0 %786  ;;  %v810_v6 = vpop.permute.xlu1 %809 }
 0x48d   :  { %v791_v50 = vadd.f32 %v787_v43, %v775_v40  ;;  %v815_v12 = vmul.f32 %v810_v6, %v453_v55 }
 0x48f   :  { %v921_v33 = vsel %vm909_vm4, %v582_v44, %v791_v50 }
 0x490   :  { %925 = vst.msk [vmem:[#allocation4 + $0x18] sm:$0xff] %vm179_vm1, %v921_v33  ;;  %vm926_vm1 = vcmask 64512  }
 0x494   :  { %v800_v28 = vpop.permute.xlu0 %799 }
 0x495   :  { %v813_v13 = vmul.f32 %v800_v28, %v451_v36 }
 0x4c2   :  { %v1165_v59 = vpop.f32.mrb[0].mxu0 }
 0x4c3   :  { %v666_v46 = vadd.f32 %v1165_v59, %v605_v56  ;;  %v649_v61 = vpop.f32.mrb[1].mxu0 }
 0x4c4   :  { %v664_v10 = vadd.f32 %v649_v61, %v603_v1  ;;  %v1166_v62 = vpop.f32.mrb[2].mxu0 }
 0x4c5   :  { %v667_v39 = vadd.f32 %v1166_v62, %v606_v60  ;;  %v652_v0 = vpop.f32.mrb[3].mxu0 }
 0x4c6   :  { %v665_v15 = vadd.f32 %v652_v0, %v604_v11 }
 0x4d5   :  { %v1177_v19 = vpop.f32.mrb[4].mxu0 }
 0x4d6   :  { %897 = vrot.lane.b32.xlu1 %v1177_v19, %s1477_s10  ;;  %v874_v3 = vpop.f32.mrb[5].mxu0 }
 0x4d7   :  { %v1178_v4 = vpop.f32.mrb[6].mxu0 }
 0x4d8   :  { %v877_v18 = vpop.f32.mrb[7].mxu0 }
 0x4da   :  { %893 = vrot.lane.b32.xlu1 %v874_v3, %s1477_s10 }
 0x4de   :  { %895 = vrot.lane.b32.xlu1 %v877_v18, %s1477_s10 }
 0x4e2   :  { %899 = vrot.lane.b32.xlu1 %v1178_v4, %s1477_s10 }
 0x548   :  { %v898_v9 = vpop.permute.xlu1 %897 }
 0x549   :  { %v907_v21 = vadd.f32 %v898_v9, %v814_v8 }
 0x54b   :  { %v929_v34 = vsel %vm926_vm1, %v666_v46, %v907_v21 }
 0x54c   :  { %933 = vst.msk [vmem:[#allocation5 + $0x10] sm:$0xff] %vm123_vm0, %v929_v34  ;;  %v894_v47 = vpop.permute.xlu1 %893 }
 0x54d   :  { %v905_v37 = vadd.f32 %v894_v47, %v812_v20 }
 0x54f   :  { %v927_v49 = vsel %vm926_vm1, %v664_v10, %v905_v37 }
 0x550   :  { %931 = vst.msk [vmem:[#allocation5] sm:$0xff] %vm123_vm0, %v927_v49  ;;  %v896_v14 = vpop.permute.xlu1 %895 }
 0x551   :  { %v906_v52 = vadd.f32 %v896_v14, %v813_v13 }
 0x553   :  { %v928_v16 = vsel %vm926_vm1, %v665_v15, %v906_v52 }
 0x554   :  { %932 = vst.msk [vmem:[#allocation5 + $0x8] sm:$0xff] %vm123_vm0, %v928_v16  ;;  %v900_v41 = vpop.permute.xlu1 %899 }
 0x555   :  { %v908_v42 = vadd.f32 %v900_v41, %v815_v12 }
 0x557   :  { %v930_v17 = vsel %vm926_vm1, %v667_v39, %v908_v42 }
 0x558   :  { %934 = vst.msk [vmem:[#allocation5 + $0x18] sm:$0xff] %vm123_vm0, %v930_v17 }
 0x559 PF:  { %v940_v48 = vld [vmem:[#allocation4 + $0x10] sm:$0xff]  ;;  %v938_v51 = vld [vmem:[#allocation4] sm:$0xff]  ;;  %v941_v22 = vld [vmem:[#allocation4 + $0x18] sm:$0xff]  ;;  %v1478_v23 = vmov 0   ;;  %v1479_v29 = vmov 1   ;;  %vm998_vm0 = vcmask 64512  }
 0x55a   :  { %1283 = vset.pattern.permute.xlu1 %v1478_v23  ;;  %1282 = vset.pattern.permute.xlu0 %v1478_v23  ;;  %v944_v58 = vmax.f32 %v940_v48, 1e-20  ;;  %v942_v24 = vmax.f32 %v938_v51, 1e-20  ;;  %v945_v2 = vmax.f32 %v941_v22, 1e-20 }
 0x55b   :  { %v939_v25 = vld [vmem:[#allocation4 + $0x8] sm:$0xff]  ;;  %v946_v38 = vld [vmem:[#allocation5] sm:$0xff]  ;;  %v1082_v44 = vld [vmem:[#allocation17] ss:$0 sm:$0xff]  ;;  %vm1034_vm5 = vcmask 125952   ;;  %s1480_s11 = smov [#allocation19]  }
 0x55c   :  { %1286 = vrcp.f32 %v944_v58  ;;  %v943_v26 = vmax.f32 %v939_v25, 1e-20  ;;  %v947_v7 = vld [vmem:[#allocation5 + $0x8] sm:$0xff]  ;;  %v948_v53 = vld [vmem:[#allocation5 + $0x10] sm:$0xff]  ;;  %s1044_s13 = sshll.u32 %s1480_s11, 4  ;;  %s1045_s13 = int_to_ptr.vmem [resolvable:$true] %s1044_s13 }
 0x55d   :  { %1288 = vrcp.f32 %v942_v24  ;;  %s1426_s14 = scalar_lea.vmem %s1045_s13, 256  ;;  %p1431_p10 = scmp.lt.s32.totalorder %s1045_s13, %s1045_s13 }
 0x55e   :  { %1290 = vrcp.f32 %v945_v2  ;;  %p1427_p9 = scmp.ne.s32.totalorder %s1045_s13, %s1426_s14  ;;  %p1432_p11 = scmp.lt.s32.totalorder %s1426_s14, %s1426_s14 }
 0x55f   :  { %1292 = vrcp.f32 %v943_v26  ;;  %v949_v56 = vld [vmem:[#allocation5 + $0x18] sm:$0xff] }
 0x560   :  { %p1433_p12 = por %p1432_p11, %p1431_p10 }
 0x562   :  { %p1434_p13 = pnand %p1433_p12, %p1427_p9 }
 0x566   :  { %v1287_v57 = vpop.eup %1286 }
 0x567   :  { %v1289_v27 = vpop.eup %1288  ;;  %966 = vperm.xlu1 %1283, %v1287_v57  }
 0x568   :  { %v1291_v63 = vpop.eup %1290  ;;  %956 = vperm.xlu0 %1282, %v1289_v27  }
 0x569   :  { %v1293_v31 = vpop.eup %1292 }
 0x56b   :  { %971 = vperm.xlu1 %1283, %v1291_v63  }
 0x56c   :  { %961 = vperm.xlu0 %1282, %v1293_v31  }
 0x56f   :  { %1285 = vset.pattern.permute.xlu1 %v1479_v29 }
 0x570   :  { %1284 = vset.pattern.permute.xlu0 %v1479_v29  ;;  %983 = vperm.xlu1 %1285, %v1293_v31  }
 0x571   :  { %979 = vperm.xlu0 %1284, %v1289_v27  }
 0x574   :  { %987 = vperm.xlu1 %1285, %v1287_v57  }
 0x575   :  { %991 = vperm.xlu0 %1284, %v1291_v63  }
 0x5e6   :  { %v967_v30 = vpop.permute.xlu1 %966 }
 0x5e7   :  { %v957_v32 = vpop.permute.xlu0 %956  ;;  %v976_v61 = vmul.f32 %v967_v30, %v948_v53 }
 0x5e8   :  { %v974_v54 = vmul.f32 %v957_v32, %v946_v38 }
 0x5ea   :  { %v972_v35 = vpop.permute.xlu1 %971 }
 0x5eb   :  { %v962_v45 = vpop.permute.xlu0 %961  ;;  %v977_v0 = vmul.f32 %v972_v35, %v949_v56 }
 0x5ec   :  { %v975_v43 = vmul.f32 %v962_v45, %v947_v7 }
 0x5ef   :  { %v984_v40 = vpop.permute.xlu1 %983 }
 0x5f0   :  { %v995_v50 = vmul.f32 %v984_v40, %v947_v7  ;;  %v980_v33 = vpop.permute.xlu0 %979 }
 0x5f1   :  { %v994_v55 = vmul.f32 %v980_v33, %v946_v38 }
 0x5f2   :  { %v1000_v1 = vsel %vm998_vm0, %v975_v43, %v995_v50 }
 0x5f3   :  { %v1011_v59 = vadd.f32 %v1082_v44, %v1000_v1  ;;  %v999_v60 = vsel %vm998_vm0, %v974_v54, %v994_v55  ;;  %v988_v46 = vpop.permute.xlu1 %987 }
 0x5f4   :  { %v1010_v10 = vadd.f32 %v1082_v44, %v999_v60  ;;  %v996_v62 = vmul.f32 %v988_v46, %v948_v53  ;;  %v992_v39 = vpop.permute.xlu0 %991 }
 0x5f5   :  { %v1015_v19 = vmax.f32 %v1011_v59, 0.0  ;;  %v997_v3 = vmul.f32 %v992_v39, %v949_v56 }
 0x5f6   :  { %v1014_v4 = vmax.f32 %v1010_v10, 0.0  ;;  %v1001_v18 = vsel %vm998_vm0, %v976_v61, %v996_v62 }
 0x5f7   :  { %v1088_v5 = vpack.c.bf16 %v1015_v19, %v1015_v19  ;;  %v1012_v6 = vadd.f32 %v1082_v44, %v1001_v18  ;;  %v1002_v8 = vsel %vm998_vm0, %v977_v0, %v997_v3 }
 0x5f8   :  { %v1087_v9 = vpack.c.bf16 %v1014_v4, %v1014_v4  ;;  %v1013_v21 = vadd.f32 %v1082_v44, %v1002_v8 }
 0x5f9   :  { %v1016_v20 = vmax.f32 %v1012_v6, 0.0  ;;  %1036 = vst.msk [vmem:[#allocation19 + $0x4] sm:$0xf] %vm1034_vm5, %v1088_v5 }
 0x5fa   :  { %v1017_v34 = vmax.f32 %v1013_v21, 0.0  ;;  %1035 = vst.msk [vmem:[#allocation19] sm:$0xf] %vm1034_vm5, %v1087_v9 }
 0x5fb   :  { %v1089_v36 = vpack.c.bf16 %v1016_v20, %v1016_v20 }
 0x5fc   :  { %v1090_v28 = vpack.c.bf16 %v1017_v34, %v1017_v34 }
 0x5fd   :  { %1037 = vst.msk [vmem:[#allocation19 + $0x8] sm:$0xf] %vm1034_vm5, %v1089_v36 }
 0x5fe   :  { %1038 = vst.msk [vmem:[#allocation19 + $0xc] sm:$0xf] %vm1034_vm5, %v1090_v28 }
 0x5ff   :  { %1437 = shalt.err (!%p1434_p13)
}
 0x600   :  { %s1438_s19 = scalar_lea.hbm %s1910_s7, 256 }
 0x601   :  { %p1439_p0 = scmp.ne.s32.totalorder %s1910_s7, %s1438_s19  ;;  %p1442_p1 = scmp.lt.u32.totalorder %s1438_s19, %s1910_s7 }
 0x603   :  { %p1444_p2 = pnand %p1442_p1, %p1439_p0 }
 0x605   :  { %1447 = shalt.err (!%p1444_p2)
}
 0x606   :  { %1050 = dma.vmem_to_hbm [thread:$0]  %s1045_s13, 256, %s1910_s7, [#allocation10], %s1462_s2, %s1462_s2, %s1463_s25  }
 0x607   :  { %1456 = dma.done.wait [#allocation10], 256  }
 0x608   :  { %1457 = vsyncadd [#allocation10], 4294967040 }
 0x609   :  { %1054 = vsyncpa [#allocation9], 1 }
 0x60a   :  { %1055 = vsyncpa [#allocation12], 1 }
 0x60b   :  { %1056 = vsyncpa [#allocation15], 1 }
 0x60c   :  { %1057 = vsyncpa [#allocation18], 1 }
 0x60d   :  { %1058 = vsyncpa [#allocation10], 1 }

</bundles_post_ra>
